<compile_context>
chip_gen: v5e
topology: v5e:2x2
jax: 0.10.0
libtpu: 0.0.40
codegen_flags: <defaults>
</compile_context>

<pallas_src>
import functools

import jax
import jax.numpy as jnp
from jax.experimental import pallas as pl
from jax.experimental.pallas import tpu as pltpu


# ----------------------------- stage-1 kernel -------------------------------
# ConvTranspose2d(Cin->Cin, k=2, s=2) + per-channel PReLU, output pre-shuffled.

def convt_prelu_kernel(x_ref, w_ref, b_ref, a_ref, o_ref):
    # x_ref: (TM, W, Cin) f32      -- TM low-res rows (flattened over N*H)
    # w_ref: (2, Cin, 2*Cin) bf16  -- per-ki matrices, columns ordered (kj, cout)
    # b_ref, a_ref: (1, 2*Cin) f32 -- bias / PReLU slope tiled over kj
    # o_ref: (TM, 2, W, 2*Cin) bf16-- [i, ki, j, (kj, c)]; free reshape to NHWC
    TM, W, Cin = x_ref.shape
    xf = x_ref[...].reshape(TM * W, Cin).astype(jnp.bfloat16)
    for ki in range(2):
        y = jnp.dot(xf, w_ref[ki], preferred_element_type=jnp.float32)
        y = y + b_ref[...]
        y = jnp.where(y >= 0.0, y, a_ref[...] * y)        # PReLU (f32 epilogue)
        o_ref[:, ki, :, :] = y.reshape(TM, W, 2 * Cin).astype(o_ref.dtype)


# ----------------------------- stage-2 kernel -------------------------------
# Fused: implicit concat([cat, up], C) + implicit 3x3 zero-pad + conv + PReLU.

def concat_conv3x3_prelu_kernel(cat_mid_ref, cat_top_ref, cat_bot_ref,
                                up_mid_ref, up_top_ref, up_bot_ref,
                                w_ref, b_ref, a_ref, o_ref):
    # cat_*: (1,TH,Wo,Ccat) / (1,1,Wo,Ccat) f32 ;  up_*: same with Cin, bf16
    # w_ref: (3, 3*Ctot, Cout) bf16  -- per-kw, rows ordered (kh, [cat ch, up ch])
    # b_ref, a_ref: (1, Cout) f32
    # o_ref: (1, TH, Wo, Cout) f32
    TH, Wo = cat_mid_ref.shape[1], cat_mid_ref.shape[2]
    Cout = b_ref.shape[1]
    K3 = w_ref.shape[1]                     # 3 * (Ccat + Cin)

    # Row-halo validity: the first/last row tile sees zeros (the conv's padding).
    t = pl.program_id(1)
    n_t = pl.num_programs(1)
    top_scale = jnp.minimum(t, 1).astype(jnp.float32)            # 0 iff first tile
    bot_scale = jnp.minimum(n_t - 1 - t, 1).astype(jnp.float32)  # 0 iff last tile

    def rows_with_halo(mid_ref, top_ref, bot_ref):
        top = (top_ref[0, 0] * top_scale).astype(jnp.bfloat16)[None]
        bot = (bot_ref[0, 0] * bot_scale).astype(jnp.bfloat16)[None]
        mid = mid_ref[0].astype(jnp.bfloat16)
        return jnp.concatenate([top, mid, bot], axis=0)          # (TH+2, Wo, C)

    z_cat = rows_with_halo(cat_mid_ref, cat_top_ref, cat_bot_ref)
    z_up = rows_with_halo(up_mid_ref, up_top_ref, up_bot_ref)

    # Implicit channel concat + im2col over kh -> (TH, Wo, 3*Ctot),
    # channel order (kh-major, then [cat channels, up channels]) matches w_ref.
    parts = []
    for kh in range(3):
        parts.append(z_cat[kh:kh + TH])
        parts.append(z_up[kh:kh + TH])
    z = jnp.concatenate(parts, axis=-1)

    # Width-1 zero pad realized with in-VMEM zero columns (no jnp.pad in HBM).
    zero_col = jnp.zeros((TH, 1, K3), jnp.bfloat16)
    zp = jnp.concatenate([zero_col, z, zero_col], axis=1)        # (TH, Wo+2, 3*Ctot)

    # 3 fat matmuls (K = 3*Ctot) instead of 9 thin ones; f32 accumulation.
    acc = None
    for kw in range(3):
        zkw = zp[:, kw:kw + Wo, :].reshape(TH * Wo, K3)
        d = jnp.dot(zkw, w_ref[kw], preferred_element_type=jnp.float32)
        acc = d if acc is None else acc + d

    acc = acc + b_ref[...]
    acc = jnp.where(acc >= 0.0, acc, a_ref[...] * acc)           # PReLU (f32 epilogue)
    o_ref[...] = acc.reshape(1, TH, Wo, Cout).astype(o_ref.dtype)


# --------------------------------- wrapper -----------------------------------

def _largest_divisor_leq(n, cap):
    cap = int(max(1, min(n, cap)))
    for d in range(cap, 0, -1):
        if n % d == 0:
            return d
    return 1


@functools.partial(jax.jit, static_argnames=("tm_rows", "th_rows"))
def upsample_block_forward_nhwc(x_up, x_cat, params, *, tm_rows=None, th_rows=None):
    """x_up: (N, H, W, Cin) f32 NHWC; x_cat: (N, 2H, 2W, Ccat) f32 NHWC.
    params holds PyTorch-layout weights:
      Wt (Cin, Cin, 2, 2), bt (Cin,), at (Cin,)         -- ConvTranspose2d + PReLU
      Wc (Cout, Ccat+Cin, 3, 3), bc (Cout,), ac (Cout,) -- Conv2d(3x3, pad=1) + PReLU
    Returns NHWC (N, 2H, 2W, Cout) f32."""
    Wt, bt, at = params["Wt"], params["bt"], params["at"]
    Wc, bc, ac = params["Wc"], params["bc"], params["ac"]
    N, H, W, Cin = x_up.shape
    Ccat = x_cat.shape[-1]
    Cout, Ctot = Wc.shape[0], Wc.shape[1]
    Ho, Wo = 2 * H, 2 * W
    assert Ctot == Ccat + Cin

    # ------------- stage 1: ConvTranspose2d(k=2, s=2) + PReLU (tiled) -------------
    NH = N * H
    if tm_rows is None:  # ~1 MiB of f32 input rows per block (auto double-buffered)
        tm_rows = max(1, (1 << 20) // max(1, 4 * W * Cin))
    tm = _largest_divisor_leq(NH, tm_rows)

    x_rows = x_up.reshape(NH, W, Cin)
    # torch ConvTranspose2d weight (Cin_in, Cin_out, kH, kW) -> (ki, cin, kj*Cin+cout)
    wt_mat = jnp.transpose(Wt, (2, 0, 3, 1)).reshape(2, Cin, 2 * Cin).astype(jnp.bfloat16)
    bt_mat = jnp.tile(bt, 2)[None, :].astype(jnp.float32)
    at_mat = jnp.tile(at, 2)[None, :].astype(jnp.float32)

    up_raw = pl.pallas_call(
        convt_prelu_kernel,
        out_shape=jax.ShapeDtypeStruct((NH, 2, W, 2 * Cin), jnp.bfloat16),
        grid=(NH // tm,),
        in_specs=[
            pl.BlockSpec((tm, W, Cin), lambda i: (i, 0, 0)),
            pl.BlockSpec((2, Cin, 2 * Cin), lambda i: (0, 0, 0)),
            pl.BlockSpec((1, 2 * Cin), lambda i: (0, 0)),
            pl.BlockSpec((1, 2 * Cin), lambda i: (0, 0)),
        ],
        out_specs=pl.BlockSpec((tm, 2, W, 2 * Cin), lambda i: (i, 0, 0, 0)),
        compiler_params=pltpu.CompilerParams(dimension_semantics=("parallel",)),
    )(x_rows, wt_mat, bt_mat, at_mat)

    # Free (contiguous) reshape to NHWC -- no pixel-shuffle transpose in HBM.
    up_nhwc = up_raw.reshape(N, Ho, Wo, Cin)

    # ---- stage 2: implicit concat + implicit pad + 3x3 conv + PReLU (tiled) ----
    if th_rows is None:  # ~2 MiB of activations + im2col per row tile
        per_row = Wo * (4 * Ccat + 2 * Cin + 6 * Ctot + 4 * Cout) + 1
        th_rows = max(1, (2 << 20) // per_row)
    th = _largest_divisor_leq(Ho, th_rows)
    n_t = Ho // th

    # torch Conv2d weight (Cout, Ctot, 3, 3) -> (kw, kh*Ctot + cin, cout)
    wc_mat = jnp.transpose(Wc, (3, 2, 1, 0)).reshape(3, 3 * Ctot, Cout).astype(jnp.bfloat16)
    bc_mat = bc[None, :].astype(jnp.float32)
    ac_mat = ac[None, :].astype(jnp.float32)

    def mid_map(n, t):
        return (n, t, 0, 0)

    def top_map(n, t):      # row above the tile, clamped (masked in-kernel at edge)
        return (n, jnp.maximum(t * th - 1, 0), 0, 0)

    def bot_map(n, t):      # row below the tile, clamped (masked in-kernel at edge)
        return (n, jnp.minimum((t + 1) * th, Ho - 1), 0, 0)

    out = pl.pallas_call(
        concat_conv3x3_prelu_kernel,
        out_shape=jax.ShapeDtypeStruct((N, Ho, Wo, Cout), jnp.float32),
        grid=(N, n_t),
        in_specs=[
            pl.BlockSpec((1, th, Wo, Ccat), mid_map),
            pl.BlockSpec((1, 1, Wo, Ccat), top_map),
            pl.BlockSpec((1, 1, Wo, Ccat), bot_map),
            pl.BlockSpec((1, th, Wo, Cin), mid_map),
            pl.BlockSpec((1, 1, Wo, Cin), top_map),
            pl.BlockSpec((1, 1, Wo, Cin), bot_map),
            pl.BlockSpec((3, 3 * Ctot, Cout), lambda n, t: (0, 0, 0)),
            pl.BlockSpec((1, Cout), lambda n, t: (0, 0)),
            pl.BlockSpec((1, Cout), lambda n, t: (0, 0)),
        ],
        out_specs=pl.BlockSpec((1, th, Wo, Cout), lambda n, t: (n, t, 0, 0)),
        compiler_params=pltpu.CompilerParams(
            dimension_semantics=("parallel", "parallel")),
    )(x_cat, x_cat, x_cat, up_nhwc, up_nhwc, up_nhwc, wc_mat, bc_mat, ac_mat)

    return out


def upsample_block_forward(x_up_nchw, x_cat_nchw, params):
    """PyTorch-parity wrapper (NCHW in / NCHW out).  The transposes here are a
    one-time layout conversion at the model boundary; in an NHWC-native
    pipeline they disappear."""
    out = upsample_block_forward_nhwc(
        jnp.transpose(x_up_nchw, (0, 2, 3, 1)),
        jnp.transpose(x_cat_nchw, (0, 2, 3, 1)),
        params)
    return jnp.transpose(out, (0, 3, 1, 2))


# ------------------------- pure-JAX reference (NHWC) --------------------------

def _q(v):  # mimic the kernels' bf16 matmul operands (f32 accumulation)
    return v.astype(jnp.bfloat16).astype(jnp.float32)


def reference_forward_nhwc(x_up, x_cat, p):
    Wt, bt, at = p["Wt"], p["bt"], p["at"]
    Wc, bc, ac = p["Wc"], p["bc"], p["ac"]
    N, H, W, Cin = x_up.shape
    Cout = Wc.shape[0]
    Ho, Wo = 2 * H, 2 * W

    up = jnp.zeros((N, Ho, Wo, Cin), jnp.float32)
    for ki in range(2):
        for kj in range(2):
            contrib = jnp.einsum('nhwc,cd->nhwd', _q(x_up), _q(Wt[:, :, ki, kj]),
                                 precision='highest')
            up = up.at[:, ki::2, kj::2, :].set(contrib)
    up = up + bt
    up = jnp.where(up >= 0, up, at * up)

    z = jnp.concatenate([_q(x_cat), _q(up)], axis=-1)
    zp = jnp.pad(z, ((0, 0), (1, 1), (1, 1), (0, 0)))
    out = jnp.zeros((N, Ho, Wo, Cout), jnp.float32)
    for kh in range(3):
        for kw in range(3):
            wk = _q(Wc[:, :, kh, kw]).T                        # (Ctot, Cout)
            out = out + jnp.einsum('nhwc,cd->nhwd',
                                   zp[:, kh:kh + Ho, kw:kw + Wo, :], wk,
                                   precision='highest')
    out = out + bc
    return jnp.where(out >= 0, out, ac * out)


# ----------------------------------- main -------------------------------------

if __name__ == "__main__":
    N, Cin, Ccat, Cout = 2, 4, 4, 8
    H = W = 8          # "upsample" spatial; "concat" spatial is 2H x 2W = 16 x 16

    key = jax.random.PRNGKey(0)
    ks = jax.random.split(key, 6)
    # PyTorch-style NCHW test tensors; converted once to NHWC at the boundary.
    x_up_nchw = jax.random.normal(ks[0], (N, Cin, H, W), jnp.float32)
    x_cat_nchw = jax.random.normal(ks[1], (N, Ccat, 2 * H, 2 * W), jnp.float32)
    x_up = jnp.transpose(x_up_nchw, (0, 2, 3, 1))
    x_cat = jnp.transpose(x_cat_nchw, (0, 2, 3, 1))

    params = {
        # ConvTranspose2d(Cin, Cin, 2, stride=2): weight (Cin, Cin, 2, 2), bias (Cin,)
        "Wt": 0.1 * jax.random.normal(ks[2], (Cin, Cin, 2, 2), jnp.float32),
        "bt": 0.05 * jax.random.normal(ks[3], (Cin,), jnp.float32),
        "at": 0.25 + 0.02 * jnp.arange(Cin, dtype=jnp.float32),       # PReLU(Cin)
        # Conv2d(Ccat+Cin, Cout, 3, padding=1): weight (Cout, Ctot, 3, 3), bias (Cout,)
        "Wc": 0.1 * jax.random.normal(ks[4], (Cout, Ccat + Cin, 3, 3), jnp.float32),
        "bc": 0.05 * jax.random.normal(ks[5], (Cout,), jnp.float32),
        "ac": 0.25 + 0.01 * jnp.arange(Cout, dtype=jnp.float32),      # PReLU(Cout)
    }

    ref = reference_forward_nhwc(x_up, x_cat, params)

    # Small row tiles so the demo exercises multi-tile grids and the halo path.
    out = jax.block_until_ready(
        upsample_block_forward_nhwc(x_up, x_cat, params, tm_rows=8, th_rows=8))
    assert out.shape == (N, 2 * H, 2 * W, Cout), out.shape
    err = float(jnp.abs(out - ref).max())
    assert jnp.allclose(out, ref, atol=5e-3, rtol=5e-3), err

    # PyTorch-parity NCHW wrapper (default, single-tile path).
    out_nchw = jax.block_until_ready(
        upsample_block_forward(x_up_nchw, x_cat_nchw, params))
    err2 = float(jnp.abs(jnp.transpose(out_nchw, (0, 2, 3, 1)) - ref).max())
    assert jnp.allclose(jnp.transpose(out_nchw, (0, 2, 3, 1)), ref,
                        atol=5e-3, rtol=5e-3), err2

    print("KERNEL_OK")
</pallas_src>

<mosaic_0001>
module attributes {stable_mosaic.version = 11 : i64} {
  func.func @convt_prelu_kernel(%arg0: i32, %arg1: memref<8x8x4xf32, #tpu.memory_space<vmem>>, %arg2: memref<2x4x8xbf16, #tpu.memory_space<vmem>>, %arg3: memref<1x8xf32, #tpu.memory_space<vmem>>, %arg4: memref<1x8xf32, #tpu.memory_space<vmem>>, %arg5: memref<8x2x8x8xbf16, #tpu.memory_space<vmem>>) attributes {dimension_semantics = [#tpu.dimension_semantics<parallel>], iteration_bounds = array<i64: 2>, scalar_prefetch = 0 : i64, scratch_operands = 0 : i64, tpu.core_type = #tpu.core_type<tc>, window_params = [{transform_indices = @transform_0, window_bounds = array<i64: 8, 8, 4>}, {pipeline_mode = #tpu.pipeline_mode<synchronous>, transform_indices = @transform_1, window_bounds = array<i64: 2, 4, 8>}, {pipeline_mode = #tpu.pipeline_mode<synchronous>, transform_indices = @transform_2, window_bounds = array<i64: 1, 8>}, {pipeline_mode = #tpu.pipeline_mode<synchronous>, transform_indices = @transform_3, window_bounds = array<i64: 1, 8>}, {transform_indices = @transform_4, window_bounds = array<i64: 8, 2, 8, 8>}]} {
    %c0 = arith.constant 0 : index
    %c0_0 = arith.constant 0 : index
    %c0_1 = arith.constant 0 : index
    %0 = vector.load %arg1[%c0, %c0_0, %c0_1] : memref<8x8x4xf32, #tpu.memory_space<vmem>>, vector<8x8x4xf32>
    %1 = vector.shape_cast %0 : vector<8x8x4xf32> to vector<64x4xf32>
    %2 = arith.truncf %1 : vector<64x4xf32> to vector<64x4xbf16>
    %c0_2 = arith.constant 0 : index
    %c0_3 = arith.constant 0 : index
    %c0_4 = arith.constant 0 : index
    %3 = vector.load %arg2[%c0_2, %c0_3, %c0_4] : memref<2x4x8xbf16, #tpu.memory_space<vmem>>, vector<1x4x8xbf16>
    %4 = vector.shape_cast %3 : vector<1x4x8xbf16> to vector<4x8xbf16>
    %cst = arith.constant dense<0.000000e+00> : vector<64x8xf32>
    %5 = tpu.matmul %2, %4, %cst {dimension_numbers = #tpu.dot_dimension_numbers<[1], [0], [0], [1], [0, 0, 1, 1], [], []>} : vector<64x4xbf16>, vector<4x8xbf16>, vector<64x8xf32> -> vector<64x8xf32>
    %c0_5 = arith.constant 0 : index
    %c0_6 = arith.constant 0 : index
    %6 = vector.load %arg3[%c0_5, %c0_6] : memref<1x8xf32, #tpu.memory_space<vmem>>, vector<1x8xf32>
    %7 = vector.broadcast %6 : vector<1x8xf32> to vector<64x8xf32>
    %8 = arith.addf %5, %7 : vector<64x8xf32>
    %cst_7 = arith.constant 0.000000e+00 : f32
    %9 = vector.broadcast %cst_7 : f32 to vector<64x8xf32>
    %10 = arith.cmpf oge, %8, %9 : vector<64x8xf32>
    %c0_8 = arith.constant 0 : index
    %c0_9 = arith.constant 0 : index
    %11 = vector.load %arg4[%c0_8, %c0_9] : memref<1x8xf32, #tpu.memory_space<vmem>>, vector<1x8xf32>
    %12 = vector.broadcast %11 : vector<1x8xf32> to vector<64x8xf32>
    %13 = arith.mulf %12, %8 : vector<64x8xf32>
    %14 = arith.select %10, %8, %13 : vector<64x8xi1>, vector<64x8xf32>
    %15 = vector.shape_cast %14 : vector<64x8xf32> to vector<8x8x8xf32>
    %16 = arith.truncf %15 : vector<8x8x8xf32> to vector<8x8x8xbf16>
    %c0_10 = arith.constant 0 : index
    %c0_11 = arith.constant 0 : index
    %c0_12 = arith.constant 0 : index
    %c0_13 = arith.constant 0 : index
    %17 = vector.load %arg5[%c0_10, %c0_11, %c0_12, %c0_13] : memref<8x2x8x8xbf16, #tpu.memory_space<vmem>>, vector<8x1x8x8xbf16>
    %18 = vector.shape_cast %17 : vector<8x1x8x8xbf16> to vector<8x8x8xbf16>
    %19 = vector.shape_cast %16 : vector<8x8x8xbf16> to vector<8x1x8x8xbf16>
    tpu.vector_store %arg5[%c0_10, %c0_11, %c0_12, %c0_13], %19 {strides = array<i32>} : memref<8x2x8x8xbf16, #tpu.memory_space<vmem>>, vector<8x1x8x8xbf16>,
    %c1 = arith.constant 1 : index
    %c0_14 = arith.constant 0 : index
    %c0_15 = arith.constant 0 : index
    %20 = vector.load %arg2[%c1, %c0_14, %c0_15] : memref<2x4x8xbf16, #tpu.memory_space<vmem>>, vector<1x4x8xbf16>
    %21 = vector.shape_cast %20 : vector<1x4x8xbf16> to vector<4x8xbf16>
    %cst_16 = arith.constant dense<0.000000e+00> : vector<64x8xf32>
    %22 = tpu.matmul %2, %21, %cst_16 {dimension_numbers = #tpu.dot_dimension_numbers<[1], [0], [0], [1], [0, 0, 1, 1], [], []>} : vector<64x4xbf16>, vector<4x8xbf16>, vector<64x8xf32> -> vector<64x8xf32>
    %c0_17 = arith.constant 0 : index
    %c0_18 = arith.constant 0 : index
    %23 = vector.load %arg3[%c0_17, %c0_18] : memref<1x8xf32, #tpu.memory_space<vmem>>, vector<1x8xf32>
    %24 = vector.broadcast %23 : vector<1x8xf32> to vector<64x8xf32>
    %25 = arith.addf %22, %24 : vector<64x8xf32>
    %cst_19 = arith.constant 0.000000e+00 : f32
    %26 = vector.broadcast %cst_19 : f32 to vector<64x8xf32>
    %27 = arith.cmpf oge, %25, %26 : vector<64x8xf32>
    %c0_20 = arith.constant 0 : index
    %c0_21 = arith.constant 0 : index
    %28 = vector.load %arg4[%c0_20, %c0_21] : memref<1x8xf32, #tpu.memory_space<vmem>>, vector<1x8xf32>
    %29 = vector.broadcast %28 : vector<1x8xf32> to vector<64x8xf32>
    %30 = arith.mulf %29, %25 : vector<64x8xf32>
    %31 = arith.select %27, %25, %30 : vector<64x8xi1>, vector<64x8xf32>
    %32 = vector.shape_cast %31 : vector<64x8xf32> to vector<8x8x8xf32>
    %33 = arith.truncf %32 : vector<8x8x8xf32> to vector<8x8x8xbf16>
    %c0_22 = arith.constant 0 : index
    %c1_23 = arith.constant 1 : index
    %c0_24 = arith.constant 0 : index
    %c0_25 = arith.constant 0 : index
    %34 = vector.load %arg5[%c0_22, %c1_23, %c0_24, %c0_25] : memref<8x2x8x8xbf16, #tpu.memory_space<vmem>>, vector<8x1x8x8xbf16>
    %35 = vector.shape_cast %34 : vector<8x1x8x8xbf16> to vector<8x8x8xbf16>
    %36 = vector.shape_cast %33 : vector<8x8x8xbf16> to vector<8x1x8x8xbf16>
    tpu.vector_store %arg5[%c0_22, %c1_23, %c0_24, %c0_25], %36 {strides = array<i32>} : memref<8x2x8x8xbf16, #tpu.memory_space<vmem>>, vector<8x1x8x8xbf16>,
    return
  }
  func.func @transform_0(%arg0: i32) -> (i32, i32, i32) {
    %c0_i32 = arith.constant 0 : i32
    %c0_i32_0 = arith.constant 0 : i32
    %c0_i32_1 = arith.constant 0 : i32
    return %arg0, %c0_i32, %c0_i32_0 : i32, i32, i32
  }
  func.func @transform_1(%arg0: i32) -> (i32, i32, i32) {
    %c0_i32 = arith.constant 0 : i32
    %c0_i32_0 = arith.constant 0 : i32
    %c0_i32_1 = arith.constant 0 : i32
    %c0_i32_2 = arith.constant 0 : i32
    return %c0_i32, %c0_i32_0, %c0_i32_1 : i32, i32, i32
  }
  func.func @transform_2(%arg0: i32) -> (i32, i32) {
    %c0_i32 = arith.constant 0 : i32
    %c0_i32_0 = arith.constant 0 : i32
    %c0_i32_1 = arith.constant 0 : i32
    return %c0_i32, %c0_i32_0 : i32, i32
  }
  func.func @transform_3(%arg0: i32) -> (i32, i32) {
    %c0_i32 = arith.constant 0 : i32
    %c0_i32_0 = arith.constant 0 : i32
    %c0_i32_1 = arith.constant 0 : i32
    return %c0_i32, %c0_i32_0 : i32, i32
  }
  func.func @transform_4(%arg0: i32) -> (i32, i32, i32, i32) {
    %c0_i32 = arith.constant 0 : i32
    %c0_i32_0 = arith.constant 0 : i32
    %c0_i32_1 = arith.constant 0 : i32
    %c0_i32_2 = arith.constant 0 : i32
    return %arg0, %c0_i32, %c0_i32_0, %c0_i32_1 : i32, i32, i32, i32
  }
}

module attributes {stable_mosaic.version = 11 : i64} {
  func.func @concat_conv3x3_prelu_kernel(%arg0: i32, %arg1: i32, %arg2: memref<1x8x16x4xf32, #tpu.memory_space<vmem>>, %arg3: memref<1x1x16x4xf32, #tpu.memory_space<vmem>>, %arg4: memref<1x1x16x4xf32, #tpu.memory_space<vmem>>, %arg5: memref<1x8x16x4xbf16, #tpu.memory_space<vmem>>, %arg6: memref<1x1x16x4xbf16, #tpu.memory_space<vmem>>, %arg7: memref<1x1x16x4xbf16, #tpu.memory_space<vmem>>, %arg8: memref<3x24x8xbf16, #tpu.memory_space<vmem>>, %arg9: memref<1x8xf32, #tpu.memory_space<vmem>>, %arg10: memref<1x8xf32, #tpu.memory_space<vmem>>, %arg11: memref<1x8x16x8xf32, #tpu.memory_space<vmem>>) attributes {dimension_semantics = [#tpu.dimension_semantics<parallel>, #tpu.dimension_semantics<parallel>], iteration_bounds = array<i64: 2, 2>, scalar_prefetch = 0 : i64, scratch_operands = 0 : i64, tpu.core_type = #tpu.core_type<tc>, window_params = [{transform_indices = @transform_0, window_bounds = array<i64: 1, 8, 16, 4>}, {transform_indices = @transform_1, window_bounds = array<i64: 1, 1, 16, 4>}, {transform_indices = @transform_2, window_bounds = array<i64: 1, 1, 16, 4>}, {transform_indices = @transform_3, window_bounds = array<i64: 1, 8, 16, 4>}, {transform_indices = @transform_4, window_bounds = array<i64: 1, 1, 16, 4>}, {transform_indices = @transform_5, window_bounds = array<i64: 1, 1, 16, 4>}, {pipeline_mode = #tpu.pipeline_mode<synchronous>, transform_indices = @transform_6, window_bounds = array<i64: 3, 24, 8>}, {pipeline_mode = #tpu.pipeline_mode<synchronous>, transform_indices = @transform_7, window_bounds = array<i64: 1, 8>}, {pipeline_mode = #tpu.pipeline_mode<synchronous>, transform_indices = @transform_8, window_bounds = array<i64: 1, 8>}, {transform_indices = @transform_9, window_bounds = array<i64: 1, 8, 16, 8>}]} {
    %c1_i32 = arith.constant 1 : i32
    %0 = arith.minsi %arg1, %c1_i32 : i32
    %1 = arith.sitofp %0 : i32 to f32
    %c1_i32_0 = arith.constant 1 : i32
    %2 = arith.subi %c1_i32_0, %arg1 : i32
    %c1_i32_1 = arith.constant 1 : i32
    %3 = arith.minsi %2, %c1_i32_1 : i32
    %4 = arith.sitofp %3 : i32 to f32
    %c0 = arith.constant 0 : index
    %c0_2 = arith.constant 0 : index
    %c0_3 = arith.constant 0 : index
    %c0_4 = arith.constant 0 : index
    %5 = vector.load %arg3[%c0, %c0_2, %c0_3, %c0_4] : memref<1x1x16x4xf32, #tpu.memory_space<vmem>>, vector<1x1x16x4xf32>
    %6 = vector.shape_cast %5 : vector<1x1x16x4xf32> to vector<16x4xf32>
    %7 = vector.broadcast %1 : f32 to vector<16x4xf32>
    %8 = arith.mulf %6, %7 : vector<16x4xf32>
    %9 = arith.truncf %8 : vector<16x4xf32> to vector<16x4xbf16>
    %10 = vector.shape_cast %9 : vector<16x4xbf16> to vector<1x16x4xbf16>
    %c0_5 = arith.constant 0 : index
    %c0_6 = arith.constant 0 : index
    %c0_7 = arith.constant 0 : index
    %c0_8 = arith.constant 0 : index
    %11 = vector.load %arg4[%c0_5, %c0_6, %c0_7, %c0_8] : memref<1x1x16x4xf32, #tpu.memory_space<vmem>>, vector<1x1x16x4xf32>
    %12 = vector.shape_cast %11 : vector<1x1x16x4xf32> to vector<16x4xf32>
    %13 = vector.broadcast %4 : f32 to vector<16x4xf32>
    %14 = arith.mulf %12, %13 : vector<16x4xf32>
    %15 = arith.truncf %14 : vector<16x4xf32> to vector<16x4xbf16>
    %16 = vector.shape_cast %15 : vector<16x4xbf16> to vector<1x16x4xbf16>
    %c0_9 = arith.constant 0 : index
    %c0_10 = arith.constant 0 : index
    %c0_11 = arith.constant 0 : index
    %c0_12 = arith.constant 0 : index
    %17 = vector.load %arg2[%c0_9, %c0_10, %c0_11, %c0_12] : memref<1x8x16x4xf32, #tpu.memory_space<vmem>>, vector<1x8x16x4xf32>
    %18 = vector.shape_cast %17 : vector<1x8x16x4xf32> to vector<8x16x4xf32>
    %19 = arith.truncf %18 : vector<8x16x4xf32> to vector<8x16x4xbf16>
    %20 = tpu.concatenate %10, %19, %16 in 0 : vector<1x16x4xbf16>, vector<8x16x4xbf16>, vector<1x16x4xbf16> -> vector<10x16x4xbf16>
    %c0_13 = arith.constant 0 : index
    %c0_14 = arith.constant 0 : index
    %c0_15 = arith.constant 0 : index
    %c0_16 = arith.constant 0 : index
    %21 = vector.load %arg6[%c0_13, %c0_14, %c0_15, %c0_16] : memref<1x1x16x4xbf16, #tpu.memory_space<vmem>>, vector<1x1x16x4xbf16>
    %22 = vector.shape_cast %21 : vector<1x1x16x4xbf16> to vector<16x4xbf16>
    %23 = arith.extf %22 : vector<16x4xbf16> to vector<16x4xf32>
    %24 = vector.broadcast %1 : f32 to vector<16x4xf32>
    %25 = arith.mulf %23, %24 : vector<16x4xf32>
    %26 = arith.truncf %25 : vector<16x4xf32> to vector<16x4xbf16>
    %27 = vector.shape_cast %26 : vector<16x4xbf16> to vector<1x16x4xbf16>
    %c0_17 = arith.constant 0 : index
    %c0_18 = arith.constant 0 : index
    %c0_19 = arith.constant 0 : index
    %c0_20 = arith.constant 0 : index
    %28 = vector.load %arg7[%c0_17, %c0_18, %c0_19, %c0_20] : memref<1x1x16x4xbf16, #tpu.memory_space<vmem>>, vector<1x1x16x4xbf16>
    %29 = vector.shape_cast %28 : vector<1x1x16x4xbf16> to vector<16x4xbf16>
    %30 = arith.extf %29 : vector<16x4xbf16> to vector<16x4xf32>
    %31 = vector.broadcast %4 : f32 to vector<16x4xf32>
    %32 = arith.mulf %30, %31 : vector<16x4xf32>
    %33 = arith.truncf %32 : vector<16x4xf32> to vector<16x4xbf16>
    %34 = vector.shape_cast %33 : vector<16x4xbf16> to vector<1x16x4xbf16>
    %c0_21 = arith.constant 0 : index
    %c0_22 = arith.constant 0 : index
    %c0_23 = arith.constant 0 : index
    %c0_24 = arith.constant 0 : index
    %35 = vector.load %arg5[%c0_21, %c0_22, %c0_23, %c0_24] : memref<1x8x16x4xbf16, #tpu.memory_space<vmem>>, vector<1x8x16x4xbf16>
    %36 = vector.shape_cast %35 : vector<1x8x16x4xbf16> to vector<8x16x4xbf16>
    %37 = tpu.concatenate %27, %36, %34 in 0 : vector<1x16x4xbf16>, vector<8x16x4xbf16>, vector<1x16x4xbf16> -> vector<10x16x4xbf16>
    %38 = vector.extract_strided_slice %20 {offsets = [0, 0, 0], sizes = [8, 16, 4], strides = [1, 1, 1]} : vector<10x16x4xbf16> to vector<8x16x4xbf16>
    %39 = vector.extract_strided_slice %37 {offsets = [0, 0, 0], sizes = [8, 16, 4], strides = [1, 1, 1]} : vector<10x16x4xbf16> to vector<8x16x4xbf16>
    %40 = vector.extract_strided_slice %20 {offsets = [1, 0, 0], sizes = [8, 16, 4], strides = [1, 1, 1]} : vector<10x16x4xbf16> to vector<8x16x4xbf16>
    %41 = vector.extract_strided_slice %37 {offsets = [1, 0, 0], sizes = [8, 16, 4], strides = [1, 1, 1]} : vector<10x16x4xbf16> to vector<8x16x4xbf16>
    %42 = vector.extract_strided_slice %20 {offsets = [2, 0, 0], sizes = [8, 16, 4], strides = [1, 1, 1]} : vector<10x16x4xbf16> to vector<8x16x4xbf16>
    %43 = vector.extract_strided_slice %37 {offsets = [2, 0, 0], sizes = [8, 16, 4], strides = [1, 1, 1]} : vector<10x16x4xbf16> to vector<8x16x4xbf16>
    %44 = tpu.concatenate %38, %39, %40, %41, %42, %43 in 2 : vector<8x16x4xbf16>, vector<8x16x4xbf16>, vector<8x16x4xbf16>, vector<8x16x4xbf16>, vector<8x16x4xbf16>, vector<8x16x4xbf16> -> vector<8x16x24xbf16>
    %cst = arith.constant 0.000000e+00 : bf16
    %45 = vector.broadcast %cst : bf16 to vector<8x1x24xbf16>
    %46 = tpu.concatenate %45, %44, %45 in 1 : vector<8x1x24xbf16>, vector<8x16x24xbf16>, vector<8x1x24xbf16> -> vector<8x18x24xbf16>
    %47 = vector.extract_strided_slice %46 {offsets = [0, 0, 0], sizes = [8, 16, 24], strides = [1, 1, 1]} : vector<8x18x24xbf16> to vector<8x16x24xbf16>
    %48 = vector.shape_cast %47 : vector<8x16x24xbf16> to vector<128x24xbf16>
    %c0_25 = arith.constant 0 : index
    %c0_26 = arith.constant 0 : index
    %c0_27 = arith.constant 0 : index
    %49 = vector.load %arg8[%c0_25, %c0_26, %c0_27] : memref<3x24x8xbf16, #tpu.memory_space<vmem>>, vector<1x24x8xbf16>
    %50 = vector.shape_cast %49 : vector<1x24x8xbf16> to vector<24x8xbf16>
    %cst_28 = arith.constant dense<0.000000e+00> : vector<128x8xf32>
    %51 = tpu.matmul %48, %50, %cst_28 {dimension_numbers = #tpu.dot_dimension_numbers<[1], [0], [0], [1], [0, 0, 1, 1], [], []>} : vector<128x24xbf16>, vector<24x8xbf16>, vector<128x8xf32> -> vector<128x8xf32>
    %52 = vector.extract_strided_slice %46 {offsets = [0, 1, 0], sizes = [8, 16, 24], strides = [1, 1, 1]} : vector<8x18x24xbf16> to vector<8x16x24xbf16>
    %53 = vector.shape_cast %52 : vector<8x16x24xbf16> to vector<128x24xbf16>
    %c1 = arith.constant 1 : index
    %c0_29 = arith.constant 0 : index
    %c0_30 = arith.constant 0 : index
    %54 = vector.load %arg8[%c1, %c0_29, %c0_30] : memref<3x24x8xbf16, #tpu.memory_space<vmem>>, vector<1x24x8xbf16>
    %55 = vector.shape_cast %54 : vector<1x24x8xbf16> to vector<24x8xbf16>
    %cst_31 = arith.constant dense<0.000000e+00> : vector<128x8xf32>
    %56 = tpu.matmul %53, %55, %cst_31 {dimension_numbers = #tpu.dot_dimension_numbers<[1], [0], [0], [1], [0, 0, 1, 1], [], []>} : vector<128x24xbf16>, vector<24x8xbf16>, vector<128x8xf32> -> vector<128x8xf32>
    %57 = arith.addf %51, %56 : vector<128x8xf32>
    %58 = vector.extract_strided_slice %46 {offsets = [0, 2, 0], sizes = [8, 16, 24], strides = [1, 1, 1]} : vector<8x18x24xbf16> to vector<8x16x24xbf16>
    %59 = vector.shape_cast %58 : vector<8x16x24xbf16> to vector<128x24xbf16>
    %c2 = arith.constant 2 : index
    %c0_32 = arith.constant 0 : index
    %c0_33 = arith.constant 0 : index
    %60 = vector.load %arg8[%c2, %c0_32, %c0_33] : memref<3x24x8xbf16, #tpu.memory_space<vmem>>, vector<1x24x8xbf16>
    %61 = vector.shape_cast %60 : vector<1x24x8xbf16> to vector<24x8xbf16>
    %cst_34 = arith.constant dense<0.000000e+00> : vector<128x8xf32>
    %62 = tpu.matmul %59, %61, %cst_34 {dimension_numbers = #tpu.dot_dimension_numbers<[1], [0], [0], [1], [0, 0, 1, 1], [], []>} : vector<128x24xbf16>, vector<24x8xbf16>, vector<128x8xf32> -> vector<128x8xf32>
    %63 = arith.addf %57, %62 : vector<128x8xf32>
    %c0_35 = arith.constant 0 : index
    %c0_36 = arith.constant 0 : index
    %64 = vector.load %arg9[%c0_35, %c0_36] : memref<1x8xf32, #tpu.memory_space<vmem>>, vector<1x8xf32>
    %65 = vector.broadcast %64 : vector<1x8xf32> to vector<128x8xf32>
    %66 = arith.addf %63, %65 : vector<128x8xf32>
    %cst_37 = arith.constant 0.000000e+00 : f32
    %67 = vector.broadcast %cst_37 : f32 to vector<128x8xf32>
    %68 = arith.cmpf oge, %66, %67 : vector<128x8xf32>
    %c0_38 = arith.constant 0 : index
    %c0_39 = arith.constant 0 : index
    %69 = vector.load %arg10[%c0_38, %c0_39] : memref<1x8xf32, #tpu.memory_space<vmem>>, vector<1x8xf32>
    %70 = vector.broadcast %69 : vector<1x8xf32> to vector<128x8xf32>
    %71 = arith.mulf %70, %66 : vector<128x8xf32>
    %72 = arith.select %68, %66, %71 : vector<128x8xi1>, vector<128x8xf32>
    %73 = vector.shape_cast %72 : vector<128x8xf32> to vector<1x8x16x8xf32>
    %c0_40 = arith.constant 0 : index
    %c0_41 = arith.constant 0 : index
    %c0_42 = arith.constant 0 : index
    %c0_43 = arith.constant 0 : index
    %74 = vector.load %arg11[%c0_40, %c0_41, %c0_42, %c0_43] : memref<1x8x16x8xf32, #tpu.memory_space<vmem>>, vector<1x8x16x8xf32>
    tpu.vector_store %arg11[%c0_40, %c0_41, %c0_42, %c0_43], %73 {strides = array<i32>} : memref<1x8x16x8xf32, #tpu.memory_space<vmem>>, vector<1x8x16x8xf32>,
    return
  }
  func.func @transform_0(%arg0: i32, %arg1: i32) -> (i32, i32, i32, i32) {
    %c0_i32 = arith.constant 0 : i32
    %c0_i32_0 = arith.constant 0 : i32
    %c0_i32_1 = arith.constant 0 : i32
    return %arg0, %arg1, %c0_i32, %c0_i32_0 : i32, i32, i32, i32
  }
  func.func @transform_1(%arg0: i32, %arg1: i32) -> (i32, i32, i32, i32) {
    %c8_i32 = arith.constant 8 : i32
    %0 = arith.muli %arg1, %c8_i32 : i32
    %c1_i32 = arith.constant 1 : i32
    %1 = arith.subi %0, %c1_i32 : i32
    %c0_i32 = arith.constant 0 : i32
    %2 = arith.maxsi %1, %c0_i32 : i32
    %c0_i32_0 = arith.constant 0 : i32
    %c0_i32_1 = arith.constant 0 : i32
    %c0_i32_2 = arith.constant 0 : i32
    return %arg0, %2, %c0_i32_0, %c0_i32_1 : i32, i32, i32, i32
  }
  func.func @transform_2(%arg0: i32, %arg1: i32) -> (i32, i32, i32, i32) {
    %c1_i32 = arith.constant 1 : i32
    %0 = arith.addi %arg1, %c1_i32 : i32
    %c8_i32 = arith.constant 8 : i32
    %1 = arith.muli %0, %c8_i32 : i32
    %c15_i32 = arith.constant 15 : i32
    %2 = arith.minsi %1, %c15_i32 : i32
    %c0_i32 = arith.constant 0 : i32
    %c0_i32_0 = arith.constant 0 : i32
    %c0_i32_1 = arith.constant 0 : i32
    return %arg0, %2, %c0_i32, %c0_i32_0 : i32, i32, i32, i32
  }
  func.func @transform_3(%arg0: i32, %arg1: i32) -> (i32, i32, i32, i32) {
    %c0_i32 = arith.constant 0 : i32
    %c0_i32_0 = arith.constant 0 : i32
    %c0_i32_1 = arith.constant 0 : i32
    return %arg0, %arg1, %c0_i32, %c0_i32_0 : i32, i32, i32, i32
  }
  func.func @transform_4(%arg0: i32, %arg1: i32) -> (i32, i32, i32, i32) {
    %c8_i32 = arith.constant 8 : i32
    %0 = arith.muli %arg1, %c8_i32 : i32
    %c1_i32 = arith.constant 1 : i32
    %1 = arith.subi %0, %c1_i32 : i32
    %c0_i32 = arith.constant 0 : i32
    %2 = arith.maxsi %1, %c0_i32 : i32
    %c0_i32_0 = arith.constant 0 : i32
    %c0_i32_1 = arith.constant 0 : i32
    %c0_i32_2 = arith.constant 0 : i32
    return %arg0, %2, %c0_i32_0, %c0_i32_1 : i32, i32, i32, i32
  }
  func.func @transform_5(%arg0: i32, %arg1: i32) -> (i32, i32, i32, i32) {
    %c1_i32 = arith.constant 1 : i32
    %0 = arith.addi %arg1, %c1_i32 : i32
    %c8_i32 = arith.constant 8 : i32
    %1 = arith.muli %0, %c8_i32 : i32
    %c15_i32 = arith.constant 15 : i32
    %2 = arith.minsi %1, %c15_i32 : i32
    %c0_i32 = arith.constant 0 : i32
    %c0_i32_0 = arith.constant 0 : i32
    %c0_i32_1 = arith.constant 0 : i32
    return %arg0, %2, %c0_i32, %c0_i32_0 : i32, i32, i32, i32
  }
  func.func @transform_6(%arg0: i32, %arg1: i32) -> (i32, i32, i32) {
    %c0_i32 = arith.constant 0 : i32
    %c0_i32_0 = arith.constant 0 : i32
    %c0_i32_1 = arith.constant 0 : i32
    %c0_i32_2 = arith.constant 0 : i32
    return %c0_i32, %c0_i32_0, %c0_i32_1 : i32, i32, i32
  }
  func.func @transform_7(%arg0: i32, %arg1: i32) -> (i32, i32) {
    %c0_i32 = arith.constant 0 : i32
    %c0_i32_0 = arith.constant 0 : i32
    %c0_i32_1 = arith.constant 0 : i32
    return %c0_i32, %c0_i32_0 : i32, i32
  }
  func.func @transform_8(%arg0: i32, %arg1: i32) -> (i32, i32) {
    %c0_i32 = arith.constant 0 : i32
    %c0_i32_0 = arith.constant 0 : i32
    %c0_i32_1 = arith.constant 0 : i32
    return %c0_i32, %c0_i32_0 : i32, i32
  }
  func.func @transform_9(%arg0: i32, %arg1: i32) -> (i32, i32, i32, i32) {
    %c0_i32 = arith.constant 0 : i32
    %c0_i32_0 = arith.constant 0 : i32
    %c0_i32_1 = arith.constant 0 : i32
    return %arg0, %arg1, %c0_i32, %c0_i32_0 : i32, i32, i32, i32
  }
}

</mosaic_0001>

<bundles_post_ra>
// kernel: tile.19
= control target key start
LH: loop header
LB: loop body
LE: loop exit
PB: predicated region body
PF: predicated region fallthrough
CT: control target
= control target key end

     0   :  { %vm7_vm0 = vcmask 31744   ;;  %vm13_vm1 = vcmask 64544   ;;  %s39_s0 = inlined_call_operand.vmem [shape: f32[2,4], index: 0, kind: input, shape index: {}]   ;;  %s40_s1 = inlined_call_operand.vmem [shape: f32[1,8], index: 1, kind: output, shape index: {}]  }
   0x1   :  { %v4_v0 = vld [vmem:[%s39_s0] sm:$0x3]  ;;  %s22_s0 = smov 4  }
   0x2   :  { %5 = vst [vmem:[#allocation1] sm:$0x3] %v4_v0 }
   0x9   :  { %v10_v1 = vld [vmem:[#allocation1 + $0x1] sm:$0x1]   ;;  %v6_v2 = vld [vmem:[#allocation1] sm:$0x1]  }
   0xa   :  { %11 = vrot.lane.b32.xlu0 %v10_v1, %s22_s0  ;;  %8 = vst.msk [vmem:[#allocation0] sm:$0x1] %vm7_vm0, %v6_v2  }
  0x7c   :  { %v12_v3 = vpop.permute.xlu0 %11  }
  0x7d   :  { %14 = vst.msk [vmem:[#allocation0] sm:$0x1] %vm13_vm1, %v12_v3  }
  0x84   :  { %v17_v4 = vld [vmem:[#allocation0] sm:$0x1] }
  0x85   :  { %20 = vst [vmem:[%s40_s1] sm:$0x1] %v17_v4 }

// kernel: tile.18
= control target key start
LH: loop header
LB: loop body
LE: loop exit
PB: predicated region body
PF: predicated region fallthrough
CT: control target
= control target key end

     0   :  { %s22_s0 = inlined_call_operand.vmem [shape: f32[4], index: 0, kind: input, shape index: {}]   ;;  %s23_s1 = inlined_call_operand.vmem [shape: f32[2,4], index: 1, kind: output, shape index: {}]  }
   0x1   :  { %v4_v0 = vld [vmem:[%s22_s0] ss:$0 sm:$0xff] }
   0x2   :  { %5 = vst [vmem:[%s23_s1] sm:$0x3] %v4_v0 }

// kernel: upsample_block_forward_nhwc.2
= control target key start
LH: loop header
LB: loop body
LE: loop exit
PB: predicated region body
PF: predicated region fallthrough
CT: control target
= control target key end

     0   :  { %s530_s15 = smov 0   ;;  %s654_s0 = inlined_call_operand.vmem [shape: f32[16,8,4], index: 0, kind: input, shape index: {}]   ;;  %s655_s1 = inlined_call_operand.vmem [shape: bf16[2,4,8], index: 1, kind: input, shape index: {}]   ;;  %s656_s2 = inlined_call_operand.vmem [shape: f32[1,8], index: 2, kind: input, shape index: {}]   ;;  %s657_s3 = inlined_call_operand.vmem [shape: f32[1,8], index: 3, kind: input, shape index: {}]   ;;  %s658_s4 = inlined_call_operand.vmem [shape: bf16[16,2,8,8], index: 4, kind: output, shape index: {}]  }
   0x1 LB: > { %s453_s16 = sadd.s32 4294967295, %s503_s15   ;;  %p457_p0 = scmp.ge.s32.totalorder %s503_s15, 1  ;;  %s503_s15 = sphi %s530_s15, %s14_s15  }
   0x2   : > { %p163_p1 = scmp.lt.s32.totalorder %s503_s15, 3 }
   0x4   : > { %p164_p2 = pnand %p457_p0, %p163_p1 }
   0x5   : > { %s458_s21 = sshll.u32 (!%p164_p2), %s453_s16, 3 }
   0x6   : > { %167 = sbr.rel (%p164_p2) target bundleno = 183 (0xb7), region = 36  ;;  %p191_p3 = scmp.lt.s32.totalorder (!%p164_p2), %s458_s21, 15 }
   0xb   : > { %v216_v0 = vld [vmem:[%s655_s1] sm:$0x3]  ;;  %vm234_vm0 = vcmask 1041408   ;;  %v467_v1 = vld [vmem:[%s655_s1 + $0x2] sm:$0x3]  ;;  %s660_s21 = smov (!%p191_p3, %s458_s21), 15 }
   0xc   : > { %v236_v2 = vsel %vm234_vm0, %v216_v0, 0  ;;  %v319_v3 = vsel %vm234_vm0, %v467_v1, 0  ;;  %s459_s22 = sshll.u32 %s660_s21, 3  ;;  %vm221_vm1 = vcmask 31744   ;;  %v563_v16 = vld [vmem:[%s656_s2] ss:$0 sm:$0xff] }
   0xd   : > { %245 = vmatpush.bf16.msra.mxu0 %v236_v2  ;;  %483 = vmatpush.bf16.msra.mxu2 %v236_v2  ;;  %s194_s25 = scalar_lea.vmem %s654_s0, %s459_s22  ;;  %v568_v17 = vld [vmem:[%s656_s2] ss:$0 sm:$0xff]  ;;  %s589_s10 = scalar_lea.vmem %s658_s4, %s459_s22  ;;  %vm303_vm4 = vcmask 60416  }
   0xe   : > { %328 = vmatpush.bf16.msra.mxu1 %v319_v3  ;;  %484 = vmatpush.bf16.msra.mxu3 %v319_v3  ;;  %v204_v4 = vld [vmem:[%s194_s25] sm:$0xff]  ;;  %v205_v5 = vld [vmem:[%s194_s25 + $0x8] sm:$0xff]  ;;  %v206_v10 = vld [vmem:[%s194_s25 + $0x10] sm:$0xff] }
   0xf   : > { %v208_v6 = vld [vmem:[%s194_s25 + $0x20] sm:$0xff]  ;;  %v212_v7 = vpack.c.bf16 %v205_v5, %v204_v4  ;;  %v209_v8 = vld [vmem:[%s194_s25 + $0x28] sm:$0xff]  ;;  %v207_v11 = vld [vmem:[%s194_s25 + $0x18] sm:$0xff] }
  0x10   : > { %v214_v9 = vpack.c.bf16 %v209_v8, %v208_v6  ;;  %v210_v12 = vld [vmem:[%s194_s25 + $0x30] sm:$0xff]  ;;  %v211_v13 = vld [vmem:[%s194_s25 + $0x38] sm:$0xff]  ;;  %v213_v14 = vpack.c.bf16 %v207_v11, %v206_v10  ;;  %v573_v18 = vld [vmem:[%s657_s3] ss:$0 sm:$0xff] }
  0x11   : > { %463 = vmatmul.msk.bf16.vlgmr.msra.gmra.mxu0 %vm221_vm1, %v212_v7  ;;  %468 = vmatmul.msk.bf16.vlgmr.msra.gmra.mxu1 %vm221_vm1, %v212_v7  ;;  %v215_v15 = vpack.c.bf16 %v211_v13, %v210_v12  ;;  %v578_v19 = vld [vmem:[%s657_s3] ss:$0 sm:$0xff] }
  0x12   : > { %465 = vmatmul.msk.bf16.vlgmr.msra.gmra.mxu2 %vm221_vm1, %v214_v9  ;;  %470 = vmatmul.msk.bf16.vlgmr.msra.gmra.mxu3 %vm221_vm1, %v214_v9 }
  0x21   : > { %464 = vmatmul.msk.bf16.gmra.mxu0 %vm221_vm1, %v213_v14  ;;  %469 = vmatmul.msk.bf16.gmra.mxu1 %vm221_vm1, %v213_v14 }
  0x22   : > { %466 = vmatmul.msk.bf16.gmra.mxu2 %vm221_vm1, %v215_v15  ;;  %471 = vmatmul.msk.bf16.gmra.mxu3 %vm221_vm1, %v215_v15 }
  0x8e   : > { %v247_v20 = vpop.f32.mrf.mxu0  ;;  %v330_v21 = vpop.f32.mrf.mxu1 }
  0x8f   : > { %v248_v22 = vadd.f32 %v563_v16, %v247_v20  ;;  %v331_v23 = vadd.f32 %v568_v17, %v330_v21 }
  0x91   : > { %vm267_vm2 = vcmp.ge.f32.partialorder %v248_v22, 0.0  ;;  %v279_v24 = vmul.f32 %v573_v18, %v248_v22  ;;  %vm350_vm3 = vcmp.ge.f32.partialorder %v331_v23, 0.0  ;;  %v362_v25 = vmul.f32 %v578_v19, %v331_v23 }
  0x93   : > { %v287_v26 = vsel %vm267_vm2, %v248_v22, %v279_v24  ;;  %v370_v27 = vsel %vm350_vm3, %v331_v23, %v362_v25 }
  0x94   : > { %v295_v28 = vpack.c.bf16 %v287_v26, %v287_v26  ;;  %v378_v29 = vpack.c.bf16 %v370_v27, %v370_v27 }
  0x95   : > { %v257_v30 = vpop.f32.mrf.mxu2  ;;  %v340_v31 = vpop.f32.mrf.mxu3 }
  0x96   : > { %304 = vst.msk [vmem:[%s589_s10] sm:$0xf] %vm303_vm4, %v295_v28  ;;  %v258_v32 = vadd.f32 %v563_v16, %v257_v30  ;;  %v341_v33 = vadd.f32 %v568_v17, %v340_v31  ;;  %v249_v34 = vpop.f32.mrf.mxu0  ;;  %v332_v35 = vpop.f32.mrf.mxu1 }
  0x97   : > { %472 = vst.msk [vmem:[%s589_s10 + $0x4] sm:$0xf] %vm303_vm4, %v378_v29  ;;  %v250_v36 = vadd.f32 %v563_v16, %v249_v34  ;;  %v333_v37 = vadd.f32 %v568_v17, %v332_v35 }
  0x98   : > { %vm271_vm5 = vcmp.ge.f32.partialorder %v258_v32, 0.0  ;;  %v283_v38 = vmul.f32 %v573_v18, %v258_v32  ;;  %vm354_vm6 = vcmp.ge.f32.partialorder %v341_v33, 0.0  ;;  %v366_v39 = vmul.f32 %v578_v19, %v341_v33 }
  0x99   : > { %vm268_vm7 = vcmp.ge.f32.partialorder %v250_v36, 0.0  ;;  %v280_v40 = vmul.f32 %v573_v18, %v250_v36  ;;  %vm351_vm8 = vcmp.ge.f32.partialorder %v333_v37, 0.0  ;;  %v363_v41 = vmul.f32 %v578_v19, %v333_v37 }
  0x9a   : > { %v291_v42 = vsel %vm271_vm5, %v258_v32, %v283_v38  ;;  %v374_v43 = vsel %vm354_vm6, %v341_v33, %v366_v39 }
  0x9b   : > { %v299_v44 = vpack.c.bf16 %v291_v42, %v291_v42  ;;  %v382_v45 = vpack.c.bf16 %v374_v43, %v374_v43  ;;  %v288_v46 = vsel %vm268_vm7, %v250_v36, %v280_v40  ;;  %v371_v47 = vsel %vm351_vm8, %v333_v37, %v363_v41 }
  0x9c   : > { %v296_v48 = vpack.c.bf16 %v288_v46, %v288_v46  ;;  %v379_v49 = vpack.c.bf16 %v371_v47, %v371_v47 }
  0x9d   : > { %308 = vst.msk [vmem:[%s589_s10 + $0x20] sm:$0xf] %vm303_vm4, %v299_v44  ;;  %v259_v50 = vpop.f32.mrf.mxu2  ;;  %v342_v51 = vpop.f32.mrf.mxu3 }
  0x9e   : > { %476 = vst.msk [vmem:[%s589_s10 + $0x24] sm:$0xf] %vm303_vm4, %v382_v45  ;;  %v260_v52 = vadd.f32 %v563_v16, %v259_v50  ;;  %v343_v53 = vadd.f32 %v568_v17, %v342_v51  ;;  %v252_v54 = vpop.f32.mrf.mxu0  ;;  %v335_v55 = vpop.f32.mrf.mxu1 }
  0x9f   : > { %305 = vst.msk [vmem:[%s589_s10 + $0x8] sm:$0xf] %vm303_vm4, %v296_v48  ;;  %v253_v56 = vadd.f32 %v563_v16, %v252_v54  ;;  %v336_v57 = vadd.f32 %v568_v17, %v335_v55 }
  0xa0   : > { %473 = vst.msk [vmem:[%s589_s10 + $0xc] sm:$0xf] %vm303_vm4, %v379_v49  ;;  %vm272_vm9 = vcmp.ge.f32.partialorder %v260_v52, 0.0  ;;  %v284_v58 = vmul.f32 %v573_v18, %v260_v52  ;;  %vm355_vm10 = vcmp.ge.f32.partialorder %v343_v53, 0.0  ;;  %v367_v59 = vmul.f32 %v578_v19, %v343_v53 }
  0xa1   : > { %vm269_vm11 = vcmp.ge.f32.partialorder %v253_v56, 0.0  ;;  %v281_v60 = vmul.f32 %v573_v18, %v253_v56  ;;  %vm352_vm12 = vcmp.ge.f32.partialorder %v336_v57, 0.0  ;;  %v364_v61 = vmul.f32 %v578_v19, %v336_v57 }
  0xa2   : > { %v292_v62 = vsel %vm272_vm9, %v260_v52, %v284_v58  ;;  %v375_v63 = vsel %vm355_vm10, %v343_v53, %v367_v59 }
  0xa3   : > { %v300_v0 = vpack.c.bf16 %v292_v62, %v292_v62  ;;  %v383_v1 = vpack.c.bf16 %v375_v63, %v375_v63  ;;  %v289_v2 = vsel %vm269_vm11, %v253_v56, %v281_v60  ;;  %v372_v3 = vsel %vm352_vm12, %v336_v57, %v364_v61 }
  0xa4   : > { %v297_v4 = vpack.c.bf16 %v289_v2, %v289_v2  ;;  %v380_v5 = vpack.c.bf16 %v372_v3, %v372_v3 }
  0xa5   : > { %309 = vst.msk [vmem:[%s589_s10 + $0x28] sm:$0xf] %vm303_vm4, %v300_v0  ;;  %v262_v6 = vpop.f32.mrf.mxu2  ;;  %v345_v7 = vpop.f32.mrf.mxu3 }
  0xa6   : > { %477 = vst.msk [vmem:[%s589_s10 + $0x2c] sm:$0xf] %vm303_vm4, %v383_v1  ;;  %v263_v8 = vadd.f32 %v563_v16, %v262_v6  ;;  %v346_v9 = vadd.f32 %v568_v17, %v345_v7  ;;  %v254_v10 = vpop.f32.mrf.mxu0  ;;  %v337_v11 = vpop.f32.mrf.mxu1 }
  0xa7   : > { %306 = vst.msk [vmem:[%s589_s10 + $0x10] sm:$0xf] %vm303_vm4, %v297_v4  ;;  %v255_v12 = vadd.f32 %v563_v16, %v254_v10  ;;  %v338_v13 = vadd.f32 %v568_v17, %v337_v11 }
  0xa8   : > { %474 = vst.msk [vmem:[%s589_s10 + $0x14] sm:$0xf] %vm303_vm4, %v380_v5  ;;  %vm273_vm13 = vcmp.ge.f32.partialorder %v263_v8, 0.0  ;;  %v285_v14 = vmul.f32 %v573_v18, %v263_v8  ;;  %vm356_vm14 = vcmp.ge.f32.partialorder %v346_v9, 0.0  ;;  %v368_v15 = vmul.f32 %v578_v19, %v346_v9 }
  0xa9   : > { %vm270_vm15 = vcmp.ge.f32.partialorder %v255_v12, 0.0  ;;  %v282_v20 = vmul.f32 %v573_v18, %v255_v12  ;;  %vm353_vm0 = vcmp.ge.f32.partialorder %v338_v13, 0.0  ;;  %v365_v21 = vmul.f32 %v578_v19, %v338_v13 }
  0xaa   : > { %v293_v22 = vsel %vm273_vm13, %v263_v8, %v285_v14  ;;  %v376_v23 = vsel %vm356_vm14, %v346_v9, %v368_v15 }
  0xab   : > { %v301_v24 = vpack.c.bf16 %v293_v22, %v293_v22  ;;  %v384_v25 = vpack.c.bf16 %v376_v23, %v376_v23  ;;  %v290_v26 = vsel %vm270_vm15, %v255_v12, %v282_v20  ;;  %v373_v27 = vsel %vm353_vm0, %v338_v13, %v365_v21 }
  0xac   : > { %v298_v28 = vpack.c.bf16 %v290_v26, %v290_v26  ;;  %v381_v29 = vpack.c.bf16 %v373_v27, %v373_v27 }
  0xad   : > { %310 = vst.msk [vmem:[%s589_s10 + $0x30] sm:$0xf] %vm303_vm4, %v301_v24  ;;  %v264_v30 = vpop.f32.mrf.mxu2  ;;  %v347_v31 = vpop.f32.mrf.mxu3 }
  0xae   : > { %478 = vst.msk [vmem:[%s589_s10 + $0x34] sm:$0xf] %vm303_vm4, %v384_v25  ;;  %v265_v32 = vadd.f32 %v563_v16, %v264_v30  ;;  %v348_v33 = vadd.f32 %v568_v17, %v347_v31 }
  0xaf   : > { %307 = vst.msk [vmem:[%s589_s10 + $0x18] sm:$0xf] %vm303_vm4, %v298_v28 }
  0xb0   : > { %475 = vst.msk [vmem:[%s589_s10 + $0x1c] sm:$0xf] %vm303_vm4, %v381_v29  ;;  %vm274_vm1 = vcmp.ge.f32.partialorder %v265_v32, 0.0  ;;  %v286_v34 = vmul.f32 %v573_v18, %v265_v32  ;;  %vm357_vm2 = vcmp.ge.f32.partialorder %v348_v33, 0.0  ;;  %v369_v35 = vmul.f32 %v578_v19, %v348_v33 }
  0xb2   : > { %v294_v36 = vsel %vm274_vm1, %v265_v32, %v286_v34  ;;  %v377_v37 = vsel %vm357_vm2, %v348_v33, %v369_v35 }
  0xb3   : > { %v302_v38 = vpack.c.bf16 %v294_v36, %v294_v36  ;;  %v385_v39 = vpack.c.bf16 %v377_v37, %v377_v37 }
  0xb5   : > { %311 = vst.msk [vmem:[%s589_s10 + $0x38] sm:$0xf] %vm303_vm4, %v302_v38 }
  0xb6   : > { %479 = vst.msk [vmem:[%s589_s10 + $0x3c] sm:$0xf] %vm303_vm4, %v385_v39 }
  0xb7 PF: > { %s14_s15 = sadd.s32 1, %s503_s15  }
  0xb8   : > { %p11_p4 = scmp.ge.s32.totalorder %s14_s15, 4  }
  0xba   :  { %13 = sbr.rel (!%p11_p4) target bundleno = 1 (0x1), region = 68 }

// kernel: upsample_block_forward_nhwc.3
= control target key start
LH: loop header
LB: loop body
LE: loop exit
PB: predicated region body
PF: predicated region fallthrough
CT: control target
= control target key end

     0   :  { %s2134_s30 = smov 0   ;;  %s2136_s10 = smov 0   ;;  %s2627_s0 = inlined_call_operand.vmem [shape: f32[2,16,16,4], index: 0, kind: input, shape index: {}, may-alias: {0,1,2}]   ;;  %s2628_s1 = inlined_call_operand.vmem [shape: f32[2,16,16,4], index: 1, kind: input, shape index: {}, may-alias: {0,1,2}]   ;;  %s2629_s2 = inlined_call_operand.vmem [shape: f32[2,16,16,4], index: 2, kind: input, shape index: {}, may-alias: {0,1,2}]   ;;  %s2630_s3 = inlined_call_operand.vmem [shape: bf16[2,16,16,4], index: 3, kind: input, shape index: {}, may-alias: {3,4,5}]   ;;  %s2631_s4 = inlined_call_operand.vmem [shape: bf16[2,16,16,4], index: 4, kind: input, shape index: {}, may-alias: {3,4,5}]   ;;  %s2632_s5 = inlined_call_operand.vmem [shape: bf16[2,16,16,4], index: 5, kind: input, shape index: {}, may-alias: {3,4,5}]   ;;  %s2633_s6 = inlined_call_operand.vmem [shape: bf16[3,24,8], index: 6, kind: input, shape index: {}]   ;;  %s2634_s7 = inlined_call_operand.vmem [shape: f32[1,8], index: 7, kind: input, shape index: {}]   ;;  %s2635_s8 = inlined_call_operand.vmem [shape: f32[1,8], index: 8, kind: input, shape index: {}]   ;;  %s2636_s9 = inlined_call_operand.vmem [shape: f32[2,16,16,8], index: 9, kind: output, shape index: {}]  }
   0x1   :  { %2646 = sst [smem:[#allocation2_spill]] %s2627_s0  ;;  %s2138_s11 = smov 0  }
   0x2   :  { %2647 = sst [smem:[#allocation3_spill]] %s2629_s2  ;;  %s2140_s12 = smov 0  }
   0x3   :  { %2648 = sst [smem:[#allocation4_spill]] %s2630_s3  ;;  %s2142_s13 = smov 0  }
   0x4 LB: > { %s28_s14 = sadd.s32 1, %s2069_s11  ;;  %s31_s15 = sadd.s32 1, %s2073_s12  ;;  %s2077_s13 = sphi %s2142_s13, %s19_s13   ;;  %s2073_s12 = sphi %s2140_s12, %s2664_s12   ;;  %s2069_s11 = sphi %s2138_s11, %s2663_s11   ;;  %s2065_s10 = sphi %s2136_s10, %s2662_s10   ;;  %s2061_s30 = sphi %s2134_s30, %s2661_s30  }
   0x5   : > { %p29_p0 = scmp.ge.s32.totalorder %s28_s14, 2  ;;  %p1828_p1 = scmp.ge.s32.totalorder %s2077_s13, 1 }
   0x6   : > { %p455_p2 = scmp.lt.s32.totalorder %s2077_s13, 5 }
   0x7   : > { %s2666_s14 = smov (%p29_p0, %s28_s14), 0  ;;  %s2668_s15 = smov (!%p29_p0, %s31_s15), %s2073_s12 }
   0x8   : > { %p456_p3 = pnand %p1828_p1, %p455_p2  ;;  %p33_p4 = scmp.ge.s32.totalorder %s2668_s15, 2 }
   0x9   : > { %s2167_s16 = sshll.u32 (!%p456_p3), %s2061_s30, 3  ;;  %p564_p5 = scmp.lt.s32.totalorder (!%p456_p3), %s2065_s10, 1 }
   0xa   : > { %s2670_s15 = smov (%p33_p4, %s2668_s15), 0  ;;  %459 = sbr.rel (%p456_p3) target bundleno = 410 (0x19a), region = 56 }
   0xb   : > { %p566_p6 = scmp.lt.s32.totalorder (!%p456_p3), %s2167_s16, 15  ;;  %s2649_s3 = sld [smem:[#allocation4_spill]] (!%p456_p3) }
   0xc   : > { %s2650_s0 = sld [smem:[#allocation2_spill]] (!%p456_p3)  ;;  %s1962_s29 = sadd.s32 (!%p456_p3), 8, %s2167_s16 }
   0xd   : > { %p2206_p7 = scmp.lt.s32.totalorder (!%p456_p3), %s1962_s29, 15  ;;  %s2220_s24 = sadd.s32 (!%p456_p3), 4294967295, %s2167_s16 }
   0xe   : > { %s2638_s26 = smov (!%p456_p3), 20   ;;  %p665_p9 = scmp.lt.s32.totalorder (!%p456_p3), %s2061_s30, 1 }
   0xf   : > { %s2672_s10 = smov (!%p564_p5, %s2065_s10), 1  ;;  %s2674_s29 = smov (!%p2206_p7, %s1962_s29), 15  ;;  %vm1244_vm0 = vcmask 1043456   ;;  %vm930_vm1 = vcmask 31744   ;;  %vm955_vm2 = vcmask 64512   ;;  %vm972_vm3 = vcmask 97280  }
  0x10   : > { %s567_s17 = scalar_select %p566_p6, %s2167_s16, 15  ;;  %vm989_vm4 = vcmask 130048   ;;  %vm1006_vm5 = vcmask 162816   ;;  %vm1087_vm6 = vcmask 1040384   ;;  %vm1088_vm7 = vsmask.f32 256 }
  0x11   : > { %s2171_s18 = sshll.u32 %s2672_s10, 5  ;;  %s668_s10 = ssub.s32 1, %s2061_s30  ;;  %vm2384_vm8 = vmand %vm1087_vm6, %vm1088_vm7  ;;  %vm1390_vm9 = vcmask 1046528   ;;  %vm1109_vm10 = vsmask.f32 7424  ;;  %vm1219_vm11 = vcmask 195584  }
  0x12   : > { %s1830_s19 = sshll.u32 %s567_s17, 1  ;;  %s2642_s17 = smov 12  }
  0x13   : > { %s2174_s20 = sadd.s32 %s2171_s18, %s1830_s19  ;;  %s2640_s19 = smov 4  }
  0x14   : > { %s1853_s21 = sshll.u32 %s2174_s20, 2  ;;  %s2637_s22 = sshll.u32 %s2174_s20, 3 }
  0x15   : > { %s2181_s25 = scalar_lea.vmem %s2649_s3, %s1853_s21  ;;  %s2194_s28 = scalar_lea.vmem %s2650_s0, %s2637_s22 }
  0x16   : > { %v2184_v0 = vld [vmem:[%s2181_s25 + $0x30] sm:$0xff]  ;;  %v2187_v1 = vld [vmem:[%s2181_s25 + $0x28] sm:$0xff]  ;;  %v698_v2 = vld [vmem:[%s2194_s28 + $0x60] sm:$0xff]  ;;  %p2210_p8 = scmp.lt.s32.totalorder %s668_s10, 1  ;;  %s2678_s29 = smov (!%p2206_p7, %s2674_s29), 15 }
  0x17   : > { %v699_v3 = vld [vmem:[%s2194_s28 + $0x68] sm:$0xff]  ;;  %884 = vrot.lane.b32.xlu1 %v2184_v0, %s2642_s17  ;;  %842 = vrot.lane.b32.xlu0 %v2187_v1, %s2640_s19  ;;  %v714_v4 = vpack.c.bf16 %v698_v2, %v698_v2  ;;  %v700_v6 = vld [vmem:[%s2194_s28 + $0x70] sm:$0xff]  ;;  %s1847_s16 = sshll.u32 %s2678_s29, 1  ;;  %p576_p10 = scmp.gt.s32.totalorder %s2220_s24, 0 }
  0x18   : > { %v715_v5 = vpack.c.bf16 %v699_v3, %v699_v3  ;;  %v701_v7 = vld [vmem:[%s2194_s28 + $0x78] sm:$0xff]  ;;  %v686_v8 = vld [vmem:[%s2194_s28] sm:$0xff]  ;;  %v687_v9 = vld [vmem:[%s2194_s28 + $0x8] sm:$0xff]  ;;  %v716_v15 = vpack.c.bf16 %v700_v6, %v700_v6  ;;  %s2676_s10 = smov (!%p2210_p8, %s668_s10), 1  ;;  %s601_s27 = sadd.s32 %s1847_s16, %s2171_s18 }
  0x19   : > { %v2217_v10 = vld [vmem:[%s2181_s25 + $0x38] sm:$0xff]  ;;  %v780_v11 = vunpack.c.l.b16 %v714_v4  ;;  %v688_v13 = vld [vmem:[%s2194_s28 + $0x10] sm:$0xff]  ;;  %v2233_v18 = vld [vmem:[%s2181_s25] sm:$0xff]  ;;  %v717_v20 = vpack.c.bf16 %v701_v7, %v701_v7  ;;  %v702_v21 = vpack.c.bf16 %v686_v8, %v686_v8  ;;  %v703_v22 = vpack.c.bf16 %v687_v9, %v687_v9  ;;  %s671_s23 = scvt.s32.f32 %s2676_s10  ;;  %s2644_s22 = smov 8  }
  0x1a   : > { %v781_v12 = vunpack.c.l.b16 %v715_v5  ;;  %v689_v14 = vld [vmem:[%s2194_s28 + $0x18] sm:$0xff]  ;;  %926 = vrot.lane.b32.xlu2 %v2217_v10, %s2638_s26  ;;  %v704_v16 = vpack.c.bf16 %v688_v13, %v688_v13  ;;  %v848_v26 = vunpack.c.l.b16 %v716_v15  ;;  %s1849_s29 = sshll.u32 %s601_s27, 3  ;;  %p1835_p11 = scmp.lt.s32.totalorder %s2220_s24, 15  ;;  %v1968_v42 = vld [vmem:[%s2181_s25 + $0x8] sm:$0xff]  ;;  %v690_v63 = vld [vmem:[%s2194_s28 + $0x20] sm:$0xff] }
  0x1b   : > { %v705_v17 = vpack.c.bf16 %v689_v14, %v689_v14  ;;  %v849_v27 = vunpack.c.l.b16 %v717_v20  ;;  %v768_v28 = vunpack.c.l.b16 %v702_v21  ;;  %v769_v29 = vunpack.c.l.b16 %v703_v22  ;;  %s2653_s2 = sld [smem:[#allocation3_spill]]  ;;  %s1870_s19 = sshll.u32 %s601_s27, 2  ;;  %v691_v2 = vld [vmem:[%s2194_s28 + $0x28] sm:$0xff]  ;;  %v1969_v9 = vld [vmem:[%s2181_s25 + $0x10] sm:$0xff] }
  0x1c   : > { %v2235_v19 = vpack.c.b16 %v781_v12, %v780_v11  ;;  %v770_v23 = vunpack.c.l.b16 %v704_v16  ;;  %s2680_s24 = smov (!%p576_p10, %s2220_s24), 0  ;;  %s2083_s10 = smov 16   ;;  %v681_v34 = vstv %s671_s23  ;;  %v706_v4 = vpack.c.bf16 %v690_v63, %v690_v63  ;;  %v693_v11 = vld [vmem:[%s2194_s28 + $0x38] sm:$0xff]  ;;  %v694_v12 = vld [vmem:[%s2194_s28 + $0x40] sm:$0xff]  ;;  %v695_v13 = vld [vmem:[%s2194_s28 + $0x48] sm:$0xff] }
  0x1d   : > { %v771_v24 = vunpack.c.l.b16 %v705_v17  ;;  %s2682_s30 = smov (!%p665_p9, %s2061_s30), 1  ;;  %v850_v30 = vpack.c.b16 %v849_v27, %v848_v26  ;;  %v2261_v31 = vpack.c.b16 %v769_v29, %v768_v28  ;;  %s2684_s24 = smov (!%p1835_p11, %s2680_s24), 15  ;;  %v707_v5 = vpack.c.bf16 %v691_v2, %v691_v2  ;;  %v1970_v16 = vld [vmem:[%s2181_s25 + $0x18] sm:$0xff]  ;;  %v696_v27 = vld [vmem:[%s2194_s28 + $0x50] sm:$0xff] }
  0x1e   : > { %s648_s27 = scalar_lea.vmem %s2632_s5, %s1870_s19  ;;  %s667_s21 = scvt.s32.f32 %s2682_s30  ;;  %v772_v6 = vunpack.c.l.b16 %v706_v4  ;;  %v709_v15 = vpack.c.bf16 %v693_v11, %v693_v11  ;;  %v710_v17 = vpack.c.bf16 %v694_v12, %v694_v12  ;;  %v697_v28 = vld [vmem:[%s2194_s28 + $0x58] sm:$0xff]  ;;  %v712_v29 = vpack.c.bf16 %v696_v27, %v696_v27 }
  0x1f   : > { %v2241_v25 = vpack.c.b16 %v771_v24, %v770_v23  ;;  %872 = vrot.lane.b32.xlu1 %v2233_v18, %s2642_s17  ;;  %863 = vrot.lane.b32.xlu0 %v2235_v19, %s2644_s22  ;;  %s2654_s0 = smov 8   ;;  %v1983_v37 = vld [vmem:[%s648_s27] sm:$0xff]   ;;  %s2655_s30 = smov 4   ;;  %v773_v7 = vunpack.c.l.b16 %v707_v5 }
  0x20   : > { %v2276_v38 = vstv %s667_s21  ;;  %v1984_v45 = vunpack.c.l.bf16 %v1983_v37  ;;  %v1985_v46 = vunpack.c.h.bf16 %v1983_v37  ;;  %v775_v21 = vunpack.c.l.b16 %v709_v15  ;;  %v1909_v37 = vld [vmem:[%s2633_s6 + $0x14] sm:$0xf] }
  0x21   : > { %s603_s16 = scalar_lea.vmem %s2653_s2, %s1849_s29  ;;  %s1840_s29 = sshll.u32 %s2684_s24, 1  ;;  %v2294_v8 = vpack.c.b16 %v773_v7, %v772_v6  ;;  %v776_v22 = vunpack.c.l.b16 %v710_v17 }
  0x22   : > { %893 = vrot.lane.b32.xlu2 %v2241_v25, %s2083_s10  ;;  %v679_v32 = vld [vmem:[%s603_s16] sm:$0xff]  ;;  %v680_v33 = vld [vmem:[%s603_s16 + $0x8] sm:$0xff]  ;;  %s2267_s22 = sadd.s32 %s1840_s29, %s2171_s18  ;;  %v730_v53 = vmul.f32 %v1984_v45, %v681_v34  ;;  %v731_v54 = vmul.f32 %v1985_v46, %v681_v34 }
  0x23   : > { %v682_v35 = vmul.f32 %v681_v34, %v679_v32  ;;  %v683_v36 = vmul.f32 %v681_v34, %v680_v33  ;;  %s1863_s2 = sshll.u32 %s2267_s22, 2  ;;  %v778_v32 = vunpack.c.l.b16 %v712_v29  ;;  %v1971_v34 = vld [vmem:[%s2181_s25 + $0x20] sm:$0xff]  ;;  %s1842_s19 = sshll.u32 %s2267_s22, 3 }
  0x24   : > { %s631_s3 = scalar_lea.vmem %s2631_s4, %s1863_s2  ;;  %s2656_s2 = smov 20   ;;  %v732_v59 = vpack.c.bf16 %v730_v53, %v730_v53  ;;  %v733_v60 = vpack.c.bf16 %v731_v54, %v731_v54 }
  0x25   : > { %v1979_v39 = vld [vmem:[%s631_s3] sm:$0xff]   ;;  %v684_v43 = vpack.c.bf16 %v682_v35, %v682_v35  ;;  %v685_v44 = vpack.c.bf16 %v683_v36, %v683_v36  ;;  %s2657_s3 = smov 12   ;;  %s586_s29 = scalar_lea.vmem %s2628_s1, %s1842_s19 }
  0x26   : > { %v1980_v40 = vunpack.c.l.bf16 %v1979_v39  ;;  %v1981_v41 = vunpack.c.h.bf16 %v1979_v39  ;;  %v911_v61 = vunpack.c.l.b16 %v732_v59  ;;  %v912_v62 = vunpack.c.l.b16 %v733_v60  ;;  %v1108_v39 = vld [vmem:[%s2633_s6 + $0x8] sm:$0xf] }
  0x27   : > { %905 = vrot.lane.b32.xlu1 %v850_v30, %s2083_s10  ;;  %851 = vrot.lane.b32.xlu0 %v2261_v31, %s2654_s0  ;;  %v890_v51 = vunpack.c.l.b16 %v684_v43  ;;  %v891_v52 = vunpack.c.l.b16 %v685_v44  ;;  %v1936_v43 = vld [vmem:[%s2633_s6 + $0x20] sm:$0xf] }
  0x28   : > { %v722_v47 = vmul.f32 %v1980_v40, %v2276_v38  ;;  %v723_v48 = vmul.f32 %v1981_v41, %v2276_v38  ;;  %v913_v3 = vpack.c.b16 %v912_v62, %v911_v61  ;;  %v1215_v40 = vunpack.c.l.b16 %v1909_v37 }
  0x29   : > { %v892_v58 = vpack.c.b16 %v891_v52, %v890_v51  ;;  %v1302_v41 = vunpack.c.l.b16 %v1108_v39  ;;  %v1424_v44 = vunpack.c.l.b16 %v1936_v43  ;;  %v1976_v51 = vld [vmem:[%s2633_s6 + $0xc] sm:$0xff]  ;;  %v1975_v52 = vld [vmem:[%s2633_s6] sm:$0xff] }
  0x2a   : > { %v724_v49 = vpack.c.bf16 %v722_v47, %v722_v47  ;;  %v725_v50 = vpack.c.bf16 %v723_v48, %v723_v48 }
  0x2b   : > { %v1426_v47 = vpack.c.b16 %v1424_v44, %v1424_v44 }
  0x2c   : > { %v806_v55 = vunpack.c.l.b16 %v724_v49  ;;  %v807_v56 = vunpack.c.l.b16 %v725_v50  ;;  %v673_v49 = vld [vmem:[%s586_s29 + $0x8] sm:$0xff] }
  0x2d   : > { %v2359_v50 = vsel %vm1244_vm0, %v1426_v47, 0  ;;  %v676_v54 = vmul.f32 %v2276_v38, %v673_v49 }
  0x2e   : > { %v822_v57 = vpack.c.b16 %v807_v56, %v806_v55  ;;  %1461 = vmatpush.bf16.msra.mxu2 %v2359_v50 }
  0x2f   : > { %844 = vrot.lane.b32.xlu1 %v2184_v0, %s2655_s30  ;;  %914 = vrot.lane.b32.xlu0 %v1968_v42, %s2656_s2  ;;  %v678_v59 = vpack.c.bf16 %v676_v54, %v676_v54 }
  0x30   : > { %830 = vrot.lane.b32.xlu2 %v822_v57, %s2655_s30  ;;  %v2373_v57 = vld [vmem:[%s2633_s6 + $0x18] sm:$0xff] }
  0x31   : > { %v767_v62 = vunpack.c.l.b16 %v678_v59 }
  0x32   : > { %1462 = vmatpush.bf16.msra.mxu2 %v2373_v57 }
  0x37   : > { %907 = vrot.lane.b32.xlu1 %v892_v58, %s2083_s10  ;;  %886 = vrot.lane.b32.xlu0 %v2217_v10, %s2657_s3  ;;  %v692_v10 = vld [vmem:[%s2194_s28 + $0x30] sm:$0xff]  ;;  %s2660_s28 = sshll.u32 %s2174_s20, 3 }
  0x38   : > { %865 = vrot.lane.b32.xlu2 %v850_v30, %s2654_s0  ;;  %v708_v14 = vpack.c.bf16 %v692_v10, %v692_v10  ;;  %v713_v30 = vpack.c.bf16 %v697_v28, %v697_v28 }
  0x3a   : > { %v774_v20 = vunpack.c.l.b16 %v708_v14  ;;  %v779_v33 = vunpack.c.l.b16 %v713_v30 }
  0x3c   : > { %v2314_v24 = vpack.c.b16 %v775_v21, %v774_v20  ;;  %v788_v35 = vpack.c.b16 %v779_v33, %v778_v32 }
  0x3f   : > { %853 = vrot.lane.b32.xlu1 %v2241_v25, %s2654_s0  ;;  %928 = vrot.lane.b32.xlu0 %v913_v3, %s2656_s2 }
  0x40   : > { %832 = vrot.lane.b32.xlu2 %v2233_v18, %s2655_s30  ;;  %v711_v18 = vpack.c.bf16 %v695_v13, %v695_v13 }
  0x42   : > { %v777_v23 = vunpack.c.l.b16 %v711_v18 }
  0x44   : > { %v2316_v26 = vpack.c.b16 %v777_v23, %v776_v22 }
  0x47   : > { %895 = vrot.lane.b32.xlu0 %v2294_v8, %s2083_s10  ;;  %916 = vrot.lane.b32.xlu1 %v1969_v9, %s2656_s2 }
  0x48   : > { %874 = vrot.lane.b32.xlu2 %v1968_v42, %s2657_s3 }
  0x4f   : > { %855 = vrot.lane.b32.xlu0 %v2294_v8, %s2654_s0  ;;  %876 = vrot.lane.b32.xlu1 %v1969_v9, %s2657_s3 }
  0x50   : > { %834 = vrot.lane.b32.xlu2 %v1968_v42, %s2655_s30  ;;  %v1217_v42 = vpack.c.b16 %v1215_v40, %v1215_v40 }
  0x52   : > { %v1246_v45 = vsel %vm1244_vm0, %v1217_v42, 0 }
  0x53   : > { %1986 = vmatpush.bf16.msra.mxu3 %v1246_v45  ;;  %1254 = vmatpush.bf16.msra.mxu0 %v1246_v45 }
  0x57   : > { %918 = vrot.lane.b32.xlu0 %v1970_v16, %s2656_s2  ;;  %836 = vrot.lane.b32.xlu1 %v1969_v9, %s2655_s30 }
  0x58   : > { %897 = vrot.lane.b32.xlu2 %v2314_v24, %s2083_s10  ;;  %1987 = vmatpush.bf16.msra.mxu3 %v1976_v51 }
  0x59   : > { %1255 = vmatpush.bf16.msra.mxu0 %v1976_v51 }
  0x5f   : > { %878 = vrot.lane.b32.xlu0 %v1970_v16, %s2657_s3  ;;  %899 = vrot.lane.b32.xlu1 %v2316_v26, %s2083_s10 }
  0x60   : > { %857 = vrot.lane.b32.xlu2 %v2314_v24, %s2654_s0 }
  0x67   : > { %838 = vrot.lane.b32.xlu0 %v1970_v16, %s2655_s30  ;;  %859 = vrot.lane.b32.xlu1 %v2316_v26, %s2654_s0 }
  0x68   : > { %920 = vrot.lane.b32.xlu2 %v1971_v34, %s2656_s2 }
  0x6f   : > { %901 = vrot.lane.b32.xlu0 %v788_v35, %s2083_s10  ;;  %922 = vrot.lane.b32.xlu1 %v2187_v1, %s2656_s2 }
  0x70   : > { %880 = vrot.lane.b32.xlu2 %v1971_v34, %s2657_s3 }
  0x74   : > { %v2339_v36 = vpop.permute.xlu2 %926 }
  0x77   : > { %861 = vrot.lane.b32.xlu0 %v788_v35, %s2654_s0  ;;  %882 = vrot.lane.b32.xlu1 %v2187_v1, %s2657_s3  ;;  %v1304_v1 = vpack.c.b16 %v1302_v41, %v1302_v41  ;;  %s2537_s0 = scalar_lea.vmem %s2636_s9, %s2660_s28 }
  0x78   : > { %840 = vrot.lane.b32.xlu2 %v1971_v34, %s2655_s30 }
  0x79   : > { %v1323_v46 = vsel %vm1244_vm0, %v1304_v1, 0 }
  0x7a   : > { %1331 = vmatpush.bf16.msra.mxu1 %v1323_v46  ;;  %1988 = vmatpush.bf16.msrb.mxu3 %v1323_v46 }
  0x7c   : > { %v894_v48 = vpop.permute.xlu2 %893 }
  0x7e   : > { %1332 = vmatpush.bf16.msra.mxu1 %v1975_v52  ;;  %1989 = vmatpush.bf16.msrb.mxu3 %v1975_v52 }
  0x7f   : > { %924 = vrot.lane.b32.xlu0 %v2184_v0, %s2656_s2  ;;  %v672_v0 = vld [vmem:[%s586_s29] sm:$0xff] }
  0x80   : > { %903 = vrot.lane.b32.xlu2 %v2235_v19, %s2083_s10  ;;  %v675_v53 = vmul.f32 %v2276_v38, %v672_v0 }
  0x82   : > { %v677_v58 = vpack.c.bf16 %v675_v53, %v675_v53 }
  0x84   : > { %v766_v61 = vunpack.c.l.b16 %v677_v58 }
  0x86   : > { %v782_v38 = vpack.c.b16 %v767_v62, %v766_v61 }
  0x89   : > { %v885_v55 = vpop.permute.xlu1 %884  ;;  %v843_v56 = vpop.permute.xlu0 %842 }
  0x8a   : > { %v831_v60 = vpop.permute.xlu2 %830  ;;  %v951_v3 = vsel %vm930_vm1, %v788_v35, %v843_v56 }
  0x8b   : > { %v933_v6 = vsel %vm930_vm1, %v782_v38, %v831_v60 }
  0x91   : > { %v873_v63 = vpop.permute.xlu1 %872  ;;  %v864_v2 = vpop.permute.xlu0 %863 }
  0x92   : > { %v969_v4 = vsel %vm955_vm2, %v951_v3, %v864_v2  ;;  %v866_v5 = vpop.permute.xlu2 %865 }
  0x93   : > { %v986_v9 = vsel %vm972_vm3, %v969_v4, %v885_v55 }
  0x99   : > { %v906_v7 = vpop.permute.xlu1 %905  ;;  %v852_v10 = vpop.permute.xlu0 %851 }
  0x9a   : > { %v1003_v11 = vsel %vm989_vm4, %v986_v9, %v906_v7  ;;  %v957_v13 = vsel %vm955_vm2, %v933_v6, %v852_v10  ;;  %v833_v20 = vpop.permute.xlu2 %832 }
  0x9b   : > { %v1020_v12 = vsel %vm1006_vm5, %v1003_v11, %v2339_v36  ;;  %v974_v18 = vsel %vm972_vm3, %v957_v13, %v873_v63 }
  0x9c   : > { %v1059_v14 = vshrl.u32 %v1020_v12, 16  ;;  %v1062_v17 = vshll.u32 %v1020_v12, 16  ;;  %v991_v27 = vsel %vm989_vm4, %v974_v18, %v894_v48 }
  0x9e   : > { %v1061_v16 = vrot.slane %v1059_v14, 7 }
  0xa0   : > { %v1064_v21 = vor.u32 %v1062_v17, %v1061_v16  ;;  %v1104_v22 = vsel %vm2384_vm8, %v1061_v16, 0 }
  0xa1   : > { %v845_v23 = vpop.permute.xlu1 %844  ;;  %v915_v28 = vpop.permute.xlu0 %914  ;;  %v1410_v33 = vrot.slane %v1104_v22, 1  ;;  %v1190_v35 = vshll.u32 %v1104_v22, 16 }
  0xa2   : > { %v2394_v29 = vsel %vm2384_vm8, 0, %v1064_v21  ;;  %v1008_v30 = vsel %vm1006_vm5, %v991_v27, %v915_v28  ;;  %v875_v46 = vpop.permute.xlu2 %874  ;;  %v954_v49 = vsel %vm930_vm1, %v2235_v19, %v845_v23 }
  0xa3   : > { %v1023_v32 = vshrl.u32 %v1008_v30, 16  ;;  %v1185_v34 = vshll.u32 %v2394_v29, 16  ;;  %v1409_v36 = vrot.slane %v2394_v29, 1  ;;  %v1026_v39 = vshll.u32 %v1008_v30, 16 }
  0xa4   : > { %v1183_v40 = vshrl.u32 %v2394_v29, 16  ;;  %v1192_v45 = vrot.slane %v1190_v35, 1  ;;  %v971_v59 = vsel %vm955_vm2, %v954_v49, %v866_v5  ;;  %v936_v5 = vsel %vm930_vm1, %v2261_v31, %v833_v20 }
  0xa5   : > { %v1025_v37 = vrot.slane %v1023_v32, 7  ;;  %v1187_v41 = vrot.slane %v1185_v34, 1  ;;  %v2401_v42 = vsel %vm1390_vm9, %v1409_v36, %v1410_v33 }
  0xa7   : > { %v1028_v1 = vor.u32 %v1026_v39, %v1025_v37  ;;  %v1098_v43 = vsel %vm2384_vm8, %v1025_v37, 0  ;;  %v1188_v44 = vor.u32 %v1187_v41, %v1183_v40 }
  0xa8   : > { %v1118_v51 = vshll.u32 %v1098_v43, 16  ;;  %v1392_v55 = vrot.slane %v1098_v43, 1 }
  0xa9   : > { %v908_v47 = vpop.permute.xlu1 %907  ;;  %v887_v48 = vpop.permute.xlu0 %886  ;;  %v1090_v0 = vsel %vm2384_vm8, 0, %v1028_v1  ;;  %v1193_v52 = vsel %vm1109_vm10, %v1188_v44, %v1192_v45 }
  0xaa   : > { %v1113_v53 = vshll.u32 %v1090_v0, 16  ;;  %1926 = vmatmul.msk.bf16.vlgmr.msra.gmra.mxu1 %vm1219_vm11, %v1090_v0  ;;  %1920 = vmatmul.msk.bf16.vlgmr.msra.gmra.mxu3 %vm1219_vm11, %v1193_v52  ;;  %v1391_v54 = vrot.slane %v1090_v0, 1  ;;  %v1111_v56 = vshrl.u32 %v1090_v0, 16  ;;  %v988_v19 = vsel %vm972_vm3, %v971_v59, %v887_v48  ;;  %v835_v4 = vpop.permute.xlu2 %834 }
  0xab   : > { %1990 = vmatpush.bf16.msra.mxu3 %v2359_v50  ;;  %v1120_v62 = vrot.slane %v1118_v51, 1  ;;  %v1005_v38 = vsel %vm989_vm4, %v988_v19, %v908_v47  ;;  %v939_v40 = vsel %vm930_vm1, %v2241_v25, %v835_v4 }
  0xac   : > { %v1115_v58 = vrot.slane %v1113_v53, 1  ;;  %v1393_v60 = vsel %vm1390_vm9, %v1391_v54, %v1392_v55 }
  0xad   : > { %1941 = vmatmul.msk.bf16.vlgmr.msra.gmra.mxu2 %vm1219_vm11, %v1393_v60 }
  0xae   : > { %v1116_v61 = vor.u32 %v1115_v58, %v1111_v56 }
  0xaf   : > { %1991 = vmatpush.bf16.msra.mxu3 %v2373_v57 }
  0xb0   : > { %v1121_v63 = vsel %vm1109_vm10, %v1116_v61, %v1120_v62 }
  0xb1   : > { %v854_v2 = vpop.permute.xlu1 %853  ;;  %1914 = vmatmul.msk.bf16.vlgmr.msra.gmra.mxu0 %vm1219_vm11, %v1121_v63  ;;  %v929_v50 = vpop.permute.xlu0 %928 }
  0xb2   : > { %v1022_v3 = vsel %vm1006_vm5, %v1005_v38, %v929_v50  ;;  %v959_v10 = vsel %vm955_vm2, %v936_v5, %v854_v2  ;;  %v898_v30 = vpop.permute.xlu2 %897 }
  0xb3   : > { %v1065_v6 = vshrl.u32 %v1022_v3, 16  ;;  %v1068_v9 = vshll.u32 %v1022_v3, 16  ;;  %v976_v13 = vsel %vm972_vm3, %v959_v10, %v875_v46 }
  0xb5   : > { %v1067_v7 = vrot.slane %v1065_v6, 7 }
  0xb7   : > { %v1070_v11 = vor.u32 %v1068_v9, %v1067_v7  ;;  %v1105_v57 = vsel %vm2384_vm8, %v1067_v7, 0 }
  0xb8   : > { %v1202_v17 = vshll.u32 %v1105_v57, 16  ;;  %v1413_v22 = vrot.slane %v1105_v57, 1 }
  0xb9   : > { %v2429_v12 = vsel %vm2384_vm8, 0, %v1070_v11  ;;  %v896_v14 = vpop.permute.xlu0 %895  ;;  %v917_v16 = vpop.permute.xlu1 %916 }
  0xba   : > { %v993_v31 = vsel %vm989_vm4, %v976_v13, %v896_v14  ;;  %v1197_v18 = vshll.u32 %v2429_v12, 16  ;;  %v1412_v21 = vrot.slane %v2429_v12, 1  ;;  %v1195_v27 = vshrl.u32 %v2429_v12, 16  ;;  %v858_v53 = vpop.permute.xlu2 %857 }
  0xbb   : > { %v1010_v20 = vsel %vm1006_vm5, %v993_v31, %v917_v16  ;;  %v1204_v36 = vrot.slane %v1202_v17, 1 }
  0xbc   : > { %v1029_v23 = vshrl.u32 %v1010_v20, 16  ;;  %v1199_v28 = vrot.slane %v1197_v18, 1  ;;  %v2438_v32 = vsel %vm1390_vm9, %v1412_v21, %v1413_v22  ;;  %v1032_v34 = vshll.u32 %v1010_v20, 16 }
  0xbe   : > { %v1031_v33 = vrot.slane %v1029_v23, 7  ;;  %v1200_v35 = vor.u32 %v1199_v28, %v1195_v27 }
  0xc0   : > { %v1034_v37 = vor.u32 %v1032_v34, %v1031_v33  ;;  %v1099_v39 = vsel %vm2384_vm8, %v1031_v33, 0  ;;  %v1205_v41 = vsel %vm1109_vm10, %v1200_v35, %v1204_v36 }
  0xc1   : > { %1921 = vmatmul.msk.bf16.gmra.mxu3 %vm1219_vm11, %v1205_v41  ;;  %v856_v1 = vpop.permute.xlu0 %855  ;;  %v877_v43 = vpop.permute.xlu1 %876  ;;  %v1130_v44 = vshll.u32 %v1099_v39, 16  ;;  %v1395_v0 = vrot.slane %v1099_v39, 1 }
  0xc2   : > { %v1091_v45 = vsel %vm2384_vm8, 0, %v1034_v37  ;;  %v961_v46 = vsel %vm955_vm2, %v939_v40, %v856_v1  ;;  %v921_v4 = vpop.permute.xlu2 %920 }
  0xc3   : > { %v1125_v47 = vshll.u32 %v1091_v45, 16  ;;  %1927 = vmatmul.msk.bf16.gmra.mxu1 %vm1219_vm11, %v1091_v45  ;;  %v1394_v48 = vrot.slane %v1091_v45, 1  ;;  %v1123_v49 = vshrl.u32 %v1091_v45, 16  ;;  %v978_v52 = vsel %vm972_vm3, %v961_v46, %v877_v43 }
  0xc4   : > { %v1132_v55 = vrot.slane %v1130_v44, 1  ;;  %v995_v56 = vsel %vm989_vm4, %v978_v52, %v898_v30 }
  0xc5   : > { %v1127_v51 = vrot.slane %v1125_v47, 1  ;;  %v1396_v25 = vsel %vm1390_vm9, %v1394_v48, %v1395_v0 }
  0xc6   : > { %1942 = vmatmul.msk.bf16.gmra.mxu2 %vm1219_vm11, %v1396_v25 }
  0xc7   : > { %v1128_v54 = vor.u32 %v1127_v51, %v1123_v49 }
  0xc9   : > { %v919_v58 = vpop.permute.xlu0 %918  ;;  %v837_v59 = vpop.permute.xlu1 %836  ;;  %v1133_v60 = vsel %vm1109_vm10, %v1128_v54, %v1132_v55 }
  0xca   : > { %v1012_v19 = vsel %vm1006_vm5, %v995_v56, %v919_v58  ;;  %1915 = vmatmul.msk.bf16.gmra.mxu0 %vm1219_vm11, %v1133_v60  ;;  %v942_v62 = vsel %vm930_vm1, %v2294_v8, %v837_v59  ;;  %v881_v27 = vpop.permute.xlu2 %880 }
  0xcb   : > { %v1035_v61 = vshrl.u32 %v1012_v19, 16  ;;  %v1038_v2 = vshll.u32 %v1012_v19, 16  ;;  %v963_v3 = vsel %vm955_vm2, %v942_v62, %v858_v53 }
  0xcd   : > { %v1037_v63 = vrot.slane %v1035_v61, 7 }
  0xcf   : > { %v1040_v38 = vor.u32 %v1038_v2, %v1037_v63  ;;  %v1100_v50 = vsel %vm2384_vm8, %v1037_v63, 0 }
  0xd0   : > { %v1142_v5 = vshll.u32 %v1100_v50, 16  ;;  %v1398_v57 = vrot.slane %v1100_v50, 1 }
  0xd1   : > { %1932 = vmatmul.msk.bf16.vlgmr.msrb.gmra.mxu3 %vm1219_vm11, %v2394_v29  ;;  %v879_v6 = vpop.permute.xlu0 %878  ;;  %v900_v7 = vpop.permute.xlu1 %899  ;;  %v1092_v9 = vsel %vm2384_vm8, 0, %v1040_v38 }
  0xd2   : > { %v980_v8 = vsel %vm972_vm3, %v963_v3, %v879_v6  ;;  %v1137_v10 = vshll.u32 %v1092_v9, 16  ;;  %v1397_v11 = vrot.slane %v1092_v9, 1  ;;  %v1135_v16 = vshrl.u32 %v1092_v9, 16  ;;  %v841_v46 = vpop.permute.xlu2 %840 }
  0xd3   : > { %v997_v13 = vsel %vm989_vm4, %v980_v8, %v900_v7  ;;  %1928 = vmatmul.msk.bf16.gmra.mxu1 %vm1219_vm11, %v1092_v9  ;;  %v1144_v21 = vrot.slane %v1142_v5, 1  ;;  %v948_v53 = vsel %vm930_vm1, %v2316_v26, %v841_v46 }
  0xd4   : > { %v1014_v14 = vsel %vm1006_vm5, %v997_v13, %v921_v4  ;;  %v1139_v17 = vrot.slane %v1137_v10, 1  ;;  %v1399_v29 = vsel %vm1390_vm9, %v1397_v11, %v1398_v57 }
  0xd5   : > { %v1041_v31 = vshrl.u32 %v1014_v14, 16  ;;  %v1044_v18 = vshll.u32 %v1014_v14, 16 }
  0xd6   : > { %1943 = vmatmul.msk.bf16.gmra.mxu2 %vm1219_vm11, %v1399_v29  ;;  %v1140_v20 = vor.u32 %v1139_v17, %v1135_v16 }
  0xd7   : > { %v1043_v22 = vrot.slane %v1041_v31, 7 }
  0xd8   : > { %v1145_v23 = vsel %vm1109_vm10, %v1140_v20, %v1144_v21 }
  0xd9   : > { %v1046_v28 = vor.u32 %v1044_v18, %v1043_v22  ;;  %v839_v30 = vpop.permute.xlu0 %838  ;;  %v860_v33 = vpop.permute.xlu1 %859  ;;  %v1101_v39 = vsel %vm2384_vm8, %v1043_v22, 0 }
  0xda   : > { %v945_v34 = vsel %vm930_vm1, %v2314_v24, %v839_v30  ;;  %1916 = vmatmul.msk.bf16.gmra.mxu0 %vm1219_vm11, %v1145_v23  ;;  %v1401_v44 = vrot.slane %v1101_v39, 1  ;;  %v1154_v47 = vshll.u32 %v1101_v39, 16  ;;  %v904_v62 = vpop.permute.xlu2 %903  ;;  %v2529_v39 = vld [vmem:[%s2635_s8] ss:$0 sm:$0xff] }
  0xdb   : > { %v1093_v35 = vsel %vm2384_vm8, 0, %v1046_v28  ;;  %v965_v36 = vsel %vm955_vm2, %v945_v34, %v860_v33  ;;  %v2522_v34 = vld [vmem:[%s2634_s7] ss:$0 sm:$0xff] }
  0xdc   : > { %v1149_v37 = vshll.u32 %v1093_v35, 16  ;;  %v982_v40 = vsel %vm972_vm3, %v965_v36, %v881_v27  ;;  %v1400_v24 = vrot.slane %v1093_v35, 1  ;;  %v1147_v0 = vshrl.u32 %v1093_v35, 16 }
  0xdd   : > { %v1156_v54 = vrot.slane %v1154_v47, 1 }
  0xde   : > { %v1151_v43 = vrot.slane %v1149_v37, 1  ;;  %v1402_v25 = vsel %vm1390_vm9, %v1400_v24, %v1401_v44 }
  0xe0   : > { %v1152_v52 = vor.u32 %v1151_v43, %v1147_v0 }
  0xe1   : > { %1933 = vmatmul.msk.bf16.gmra.mxu3 %vm1219_vm11, %v2429_v12  ;;  %v902_v41 = vpop.permute.xlu0 %901  ;;  %v923_v1 = vpop.permute.xlu1 %922 }
  0xe2   : > { %v999_v45 = vsel %vm989_vm4, %v982_v40, %v902_v41  ;;  %v1157_v58 = vsel %vm1109_vm10, %v1152_v52, %v1156_v54 }
  0xe3   : > { %v1016_v48 = vsel %vm1006_vm5, %v999_v45, %v923_v1  ;;  %1929 = vmatmul.msk.bf16.gmra.mxu1 %vm1219_vm11, %v1093_v35 }
  0xe4   : > { %v1047_v49 = vshrl.u32 %v1016_v48, 16  ;;  %v1050_v51 = vshll.u32 %v1016_v48, 16 }
  0xe6   : > { %v1049_v12 = vrot.slane %v1047_v49, 7  ;;  %1944 = vmatmul.msk.bf16.gmra.mxu2 %vm1219_vm11, %v1402_v25 }
  0xe8   : > { %v1052_v55 = vor.u32 %v1050_v51, %v1049_v12  ;;  %v1102_v63 = vsel %vm2384_vm8, %v1049_v12, 0 }
  0xe9   : > { %v862_v56 = vpop.permute.xlu0 %861  ;;  %v883_v59 = vpop.permute.xlu1 %882  ;;  %v1166_v38 = vshll.u32 %v1102_v63, 16  ;;  %v1404_v6 = vrot.slane %v1102_v63, 1 }
  0xea   : > { %v967_v60 = vsel %vm955_vm2, %v948_v53, %v862_v56  ;;  %1917 = vmatmul.msk.bf16.gmra.mxu0 %vm1219_vm11, %v1157_v58  ;;  %v1094_v19 = vsel %vm2384_vm8, 0, %v1052_v55 }
  0xeb   : > { %v984_v61 = vsel %vm972_vm3, %v967_v60, %v883_v59  ;;  %v1161_v26 = vshll.u32 %v1094_v19, 16  ;;  %v1159_v3 = vshrl.u32 %v1094_v19, 16  ;;  %v1403_v5 = vrot.slane %v1094_v19, 1 }
  0xec   : > { %v1001_v2 = vsel %vm989_vm4, %v984_v61, %v904_v62  ;;  %v1168_v13 = vrot.slane %v1166_v38, 1 }
  0xed   : > { %v1163_v4 = vrot.slane %v1161_v26, 1  ;;  %v1405_v11 = vsel %vm1390_vm9, %v1403_v5, %v1404_v6 }
  0xef   : > { %v1164_v57 = vor.u32 %v1163_v4, %v1159_v3 }
  0xf1   : > { %1947 = vmatmul.msk.bf16.vlgmr.msra.gmra.mxu3 %vm1219_vm11, %v2401_v42  ;;  %v925_v50 = vpop.permute.xlu0 %924  ;;  %v1169_v42 = vsel %vm1109_vm10, %v1164_v57, %v1168_v13 }
  0xf2   : > { %v1018_v7 = vsel %vm1006_vm5, %v1001_v2, %v925_v50 }
  0xf3   : > { %v1053_v9 = vshrl.u32 %v1018_v7, 16  ;;  %v1056_v8 = vshll.u32 %v1018_v7, 16  ;;  %1930 = vmatmul.msk.bf16.gmra.mxu1 %vm1219_vm11, %v1094_v19 }
  0xf5   : > { %v1055_v10 = vrot.slane %v1053_v9, 7 }
  0xf6   : > { %1945 = vmatmul.msk.bf16.gmra.mxu2 %vm1219_vm11, %v1405_v11 }
  0xf7   : > { %v1058_v14 = vor.u32 %v1056_v8, %v1055_v10  ;;  %v1103_v17 = vsel %vm2384_vm8, %v1055_v10, 0 }
  0xf8   : > { %v1178_v31 = vshll.u32 %v1103_v17, 16  ;;  %v1407_v22 = vrot.slane %v1103_v17, 1 }
  0xf9   : > { %v1095_v16 = vsel %vm2384_vm8, 0, %v1058_v14 }
  0xfa   : > { %1918 = vmatmul.msk.bf16.gmra.mxu0 %vm1219_vm11, %v1169_v42  ;;  %v1173_v29 = vshll.u32 %v1095_v16, 16  ;;  %v1171_v18 = vshrl.u32 %v1095_v16, 16  ;;  %v1406_v21 = vrot.slane %v1095_v16, 1  ;;  %v1180_v28 = vrot.slane %v1178_v31, 1 }
  0xfc   : > { %v1175_v20 = vrot.slane %v1173_v29, 1  ;;  %v1408_v23 = vsel %vm1390_vm9, %v1406_v21, %v1407_v22 }
  0xfe   : > { %v1176_v27 = vor.u32 %v1175_v20, %v1171_v18 }
 0x100   : > { %v1181_v15 = vsel %vm1109_vm10, %v1176_v27, %v1180_v28 }
 0x101   : > { %1948 = vmatmul.msk.bf16.gmra.mxu3 %vm1219_vm11, %v2438_v32 }
 0x103   : > { %1931 = vmatmul.msk.bf16.gmra.mxu1 %vm1219_vm11, %v1095_v16 }
 0x106   : > { %1946 = vmatmul.msk.bf16.gmra.mxu2 %vm1219_vm11, %v1408_v23 }
 0x10a   : > { %1919 = vmatmul.msk.bf16.gmra.mxu0 %vm1219_vm11, %v1181_v15 }
 0x127   : > { %v1334_v30 = vpop.f32.mrf.mxu1 }
 0x12d   : > { %v2524_v36 = vpop.f32.mrf.mxu3 }
 0x12e   : > { %v1257_v33 = vpop.f32.mrf.mxu0 }
 0x12f   : > { %v1335_v32 = vadd.f32 %v1334_v30, %v1257_v33  ;;  %v1336_v41 = vpop.f32.mrf.mxu1 }
 0x130   : > { %v1464_v35 = vpop.f32.mrf.mxu2 }
 0x131   : > { %v1504_v37 = vadd.f32 %v1464_v35, %v1335_v32 }
 0x133   : > { %v1524_v40 = vadd.f32 %v2522_v34, %v1504_v37 }
 0x135   : > { %vm1540_vm12 = vcmp.ge.f32.partialorder %v1524_v40, 0.0  ;;  %v1560_v1 = vmul.f32 %v2529_v39, %v1524_v40  ;;  %v2542_v47 = vpop.f32.mrf.mxu3 }
 0x136   : > { %v1259_v43 = vpop.f32.mrf.mxu0 }
 0x137   : > { %v1337_v24 = vadd.f32 %v1336_v41, %v1259_v43  ;;  %v1576_v44 = vsel %vm1540_vm12, %v1524_v40, %v1560_v1 }
 0x138   : > { %1592 = vst.msk [vmem:[%s2537_s0] sm:$0xff] %vm955_vm2, %v1576_v44  ;;  %v1466_v45 = vpop.f32.mrf.mxu2 }
 0x139   : > { %v1505_v46 = vadd.f32 %v1466_v45, %v1337_v24 }
 0x13b   : > { %v1525_v48 = vadd.f32 %v2522_v34, %v1505_v46 }
 0x13d   : > { %vm1541_vm13 = vcmp.ge.f32.partialorder %v1525_v48, 0.0  ;;  %v1561_v0 = vmul.f32 %v2529_v39, %v1525_v48 }
 0x13f   : > { %v1577_v49 = vsel %vm1541_vm13, %v1525_v48, %v1561_v0 }
 0x140   : > { %v1339_v51 = vpop.f32.mrf.mxu1  ;;  %1593 = vst.msk [vmem:[%s2537_s0 + $0x8] sm:$0xff] %vm955_vm2, %v1577_v49 }
 0x144   : > { %v2548_v25 = vpop.f32.mrf.mxu3 }
 0x147   : > { %v1262_v52 = vpop.f32.mrf.mxu0 }
 0x148   : > { %v1340_v12 = vadd.f32 %v1339_v51, %v1262_v52  ;;  %v1341_v53 = vpop.f32.mrf.mxu1 }
 0x149   : > { %v1469_v54 = vpop.f32.mrf.mxu2 }
 0x14a   : > { %v1506_v55 = vadd.f32 %v1469_v54, %v1340_v12 }
 0x14c   : > { %v1526_v56 = vadd.f32 %v2522_v34, %v1506_v55  ;;  %v2551_v58 = vpop.f32.mrf.mxu3 }
 0x14e   : > { %vm1542_vm14 = vcmp.ge.f32.partialorder %v1526_v56, 0.0  ;;  %v1562_v59 = vmul.f32 %v2529_v39, %v1526_v56 }
 0x14f   : > { %v1264_v60 = vpop.f32.mrf.mxu0 }
 0x150   : > { %v1578_v19 = vsel %vm1542_vm14, %v1526_v56, %v1562_v59  ;;  %v1342_v61 = vadd.f32 %v1341_v53, %v1264_v60  ;;  %v1344_v62 = vpop.f32.mrf.mxu1 }
 0x151   : > { %1594 = vst.msk [vmem:[%s2537_s0 + $0x10] sm:$0xff] %vm955_vm2, %v1578_v19  ;;  %v1471_v63 = vpop.f32.mrf.mxu2 }
 0x152   : > { %v1507_v26 = vadd.f32 %v1471_v63, %v1342_v61 }
 0x154   : > { %v1527_v2 = vadd.f32 %v2522_v34, %v1507_v26  ;;  %v1364_v38 = vpop.f32.mrf.mxu3 }
 0x155   : > { %v1365_v43 = vadd.f32 %v1364_v38, %v2524_v36 }
 0x156   : > { %vm1543_vm15 = vcmp.ge.f32.partialorder %v1527_v2, 0.0  ;;  %v1563_v50 = vmul.f32 %v2529_v39, %v1527_v2 }
 0x157   : > { %v1267_v3 = vpop.f32.mrf.mxu0 }
 0x158   : > { %v1579_v4 = vsel %vm1543_vm15, %v1527_v2, %v1563_v50  ;;  %v1345_v5 = vadd.f32 %v1344_v62, %v1267_v3  ;;  %v1346_v6 = vpop.f32.mrf.mxu1 }
 0x159   : > { %1595 = vst.msk [vmem:[%s2537_s0 + $0x18] sm:$0xff] %vm955_vm2, %v1579_v4  ;;  %v1474_v7 = vpop.f32.mrf.mxu2 }
 0x15a   : > { %v1508_v9 = vadd.f32 %v1474_v7, %v1345_v5 }
 0x15c   : > { %v1528_v8 = vadd.f32 %v2522_v34, %v1508_v9  ;;  %v1366_v10 = vpop.f32.mrf.mxu3 }
 0x15d   : > { %v1367_v53 = vadd.f32 %v1366_v10, %v2542_v47 }
 0x15e   : > { %vm1544_vm0 = vcmp.ge.f32.partialorder %v1528_v8, 0.0  ;;  %v1564_v11 = vmul.f32 %v2529_v39, %v1528_v8 }
 0x15f   : > { %v1269_v57 = vpop.f32.mrf.mxu0 }
 0x160   : > { %v1580_v13 = vsel %vm1544_vm0, %v1528_v8, %v1564_v11  ;;  %v1347_v14 = vadd.f32 %v1346_v6, %v1269_v57  ;;  %v1349_v42 = vpop.f32.mrf.mxu1 }
 0x161   : > { %1596 = vst.msk [vmem:[%s2537_s0 + $0x20] sm:$0xff] %vm955_vm2, %v1580_v13  ;;  %v1476_v16 = vpop.f32.mrf.mxu2 }
 0x162   : > { %v1509_v17 = vadd.f32 %v1476_v16, %v1347_v14 }
 0x164   : > { %v1529_v29 = vadd.f32 %v2522_v34, %v1509_v17  ;;  %v1369_v31 = vpop.f32.mrf.mxu3 }
 0x165   : > { %v1370_v50 = vadd.f32 %v1369_v31, %v2548_v25 }
 0x166   : > { %vm1545_vm1 = vcmp.ge.f32.partialorder %v1529_v29, 0.0  ;;  %v1565_v18 = vmul.f32 %v2529_v39, %v1529_v29 }
 0x167   : > { %v1272_v20 = vpop.f32.mrf.mxu0 }
 0x168   : > { %v1581_v21 = vsel %vm1545_vm1, %v1529_v29, %v1565_v18  ;;  %v1350_v22 = vadd.f32 %v1349_v42, %v1272_v20  ;;  %v1351_v23 = vpop.f32.mrf.mxu1 }
 0x169   : > { %1597 = vst.msk [vmem:[%s2537_s0 + $0x28] sm:$0xff] %vm955_vm2, %v1581_v21  ;;  %v1479_v27 = vpop.f32.mrf.mxu2 }
 0x16a   : > { %v1510_v28 = vadd.f32 %v1479_v27, %v1350_v22 }
 0x16c   : > { %v1530_v15 = vadd.f32 %v2522_v34, %v1510_v28  ;;  %v1371_v30 = vpop.f32.mrf.mxu3 }
 0x16d   : > { %v1372_v42 = vadd.f32 %v1371_v30, %v2551_v58 }
 0x16e   : > { %vm1546_vm3 = vcmp.ge.f32.partialorder %v1530_v15, 0.0  ;;  %v1566_v33 = vmul.f32 %v2529_v39, %v1530_v15 }
 0x16f   : > { %v1274_v32 = vpop.f32.mrf.mxu0 }
 0x170   : > { %v1582_v35 = vsel %vm1546_vm3, %v1530_v15, %v1566_v33  ;;  %v1352_v37 = vadd.f32 %v1351_v23, %v1274_v32  ;;  %v1354_v40 = vpop.f32.mrf.mxu1 }
 0x171   : > { %1598 = vst.msk [vmem:[%s2537_s0 + $0x30] sm:$0xff] %vm955_vm2, %v1582_v35  ;;  %v1481_v41 = vpop.f32.mrf.mxu2 }
 0x172   : > { %v1511_v1 = vadd.f32 %v1481_v41, %v1352_v37 }
 0x174   : > { %v1531_v24 = vadd.f32 %v2522_v34, %v1511_v1  ;;  %v1494_v44 = vpop.f32.mrf.mxu3 }
 0x175   : > { %v1516_v45 = vadd.f32 %v1494_v44, %v1365_v43 }
 0x176   : > { %vm1547_vm4 = vcmp.ge.f32.partialorder %v1531_v24, 0.0  ;;  %v1567_v46 = vmul.f32 %v2529_v39, %v1531_v24 }
 0x177   : > { %v1536_v48 = vadd.f32 %v2522_v34, %v1516_v45  ;;  %v1277_v0 = vpop.f32.mrf.mxu0 }
 0x178   : > { %v1583_v49 = vsel %vm1547_vm4, %v1531_v24, %v1567_v46  ;;  %v1355_v51 = vadd.f32 %v1354_v40, %v1277_v0  ;;  %v1356_v55 = vpop.f32.mrf.mxu1 }
 0x179   : > { %1599 = vst.msk [vmem:[%s2537_s0 + $0x38] sm:$0xff] %vm955_vm2, %v1583_v49  ;;  %vm1552_vm5 = vcmp.ge.f32.partialorder %v1536_v48, 0.0  ;;  %v1572_v52 = vmul.f32 %v2529_v39, %v1536_v48  ;;  %v1484_v36 = vpop.f32.mrf.mxu2 }
 0x17a   : > { %v1512_v12 = vadd.f32 %v1484_v36, %v1355_v51 }
 0x17b   : > { %v1588_v54 = vsel %vm1552_vm5, %v1536_v48, %v1572_v52 }
 0x17c   : > { %1604 = vst.msk [vmem:[%s2537_s0 + $0x60] sm:$0xff] %vm955_vm2, %v1588_v54  ;;  %v1532_v56 = vadd.f32 %v2522_v34, %v1512_v12  ;;  %v1496_v59 = vpop.f32.mrf.mxu3 }
 0x17d   : > { %v1517_v60 = vadd.f32 %v1496_v59, %v1367_v53 }
 0x17e   : > { %vm1548_vm6 = vcmp.ge.f32.partialorder %v1532_v56, 0.0  ;;  %v1568_v19 = vmul.f32 %v2529_v39, %v1532_v56 }
 0x17f   : > { %v1537_v61 = vadd.f32 %v2522_v34, %v1517_v60  ;;  %v1279_v62 = vpop.f32.mrf.mxu0 }
 0x180   : > { %v1584_v63 = vsel %vm1548_vm6, %v1532_v56, %v1568_v19  ;;  %v1357_v26 = vadd.f32 %v1356_v55, %v1279_v62  ;;  %v1359_v6 = vpop.f32.mrf.mxu1 }
 0x181   : > { %1600 = vst.msk [vmem:[%s2537_s0 + $0x40] sm:$0xff] %vm955_vm2, %v1584_v63  ;;  %vm1553_vm7 = vcmp.ge.f32.partialorder %v1537_v61, 0.0  ;;  %v1573_v47 = vmul.f32 %v2529_v39, %v1537_v61  ;;  %v1486_v2 = vpop.f32.mrf.mxu2 }
 0x182   : > { %v1513_v38 = vadd.f32 %v1486_v2, %v1357_v26 }
 0x183   : > { %v1589_v3 = vsel %vm1553_vm7, %v1537_v61, %v1573_v47 }
 0x184   : > { %1605 = vst.msk [vmem:[%s2537_s0 + $0x68] sm:$0xff] %vm955_vm2, %v1589_v3  ;;  %v1533_v4 = vadd.f32 %v2522_v34, %v1513_v38  ;;  %v1499_v5 = vpop.f32.mrf.mxu3 }
 0x185   : > { %v1518_v7 = vadd.f32 %v1499_v5, %v1370_v50 }
 0x186   : > { %vm1549_vm8 = vcmp.ge.f32.partialorder %v1533_v4, 0.0  ;;  %v1569_v9 = vmul.f32 %v2529_v39, %v1533_v4 }
 0x187   : > { %v1538_v8 = vadd.f32 %v2522_v34, %v1518_v7  ;;  %v1282_v10 = vpop.f32.mrf.mxu0 }
 0x188   : > { %v1585_v11 = vsel %vm1549_vm8, %v1533_v4, %v1569_v9  ;;  %v1360_v57 = vadd.f32 %v1359_v6, %v1282_v10  ;;  %v1361_v20 = vpop.f32.mrf.mxu1 }
 0x189   : > { %1601 = vst.msk [vmem:[%s2537_s0 + $0x48] sm:$0xff] %vm955_vm2, %v1585_v11  ;;  %vm1554_vm9 = vcmp.ge.f32.partialorder %v1538_v8, 0.0  ;;  %v1574_v25 = vmul.f32 %v2529_v39, %v1538_v8  ;;  %v1489_v13 = vpop.f32.mrf.mxu2 }
 0x18a   : > { %v1514_v14 = vadd.f32 %v1489_v13, %v1360_v57 }
 0x18b   : > { %v1590_v16 = vsel %vm1554_vm9, %v1538_v8, %v1574_v25 }
 0x18c   : > { %1606 = vst.msk [vmem:[%s2537_s0 + $0x70] sm:$0xff] %vm955_vm2, %v1590_v16  ;;  %v1534_v17 = vadd.f32 %v2522_v34, %v1514_v14  ;;  %v1501_v29 = vpop.f32.mrf.mxu3 }
 0x18d   : > { %v1519_v31 = vadd.f32 %v1501_v29, %v1372_v42 }
 0x18e   : > { %vm1550_vm10 = vcmp.ge.f32.partialorder %v1534_v17, 0.0  ;;  %v1570_v18 = vmul.f32 %v2529_v39, %v1534_v17 }
 0x18f   : > { %v1539_v21 = vadd.f32 %v2522_v34, %v1519_v31  ;;  %v1284_v22 = vpop.f32.mrf.mxu0 }
 0x190   : > { %v1586_v23 = vsel %vm1550_vm10, %v1534_v17, %v1570_v18  ;;  %v1362_v27 = vadd.f32 %v1361_v20, %v1284_v22 }
 0x191   : > { %1602 = vst.msk [vmem:[%s2537_s0 + $0x50] sm:$0xff] %vm955_vm2, %v1586_v23  ;;  %vm1555_vm11 = vcmp.ge.f32.partialorder %v1539_v21, 0.0  ;;  %v1575_v58 = vmul.f32 %v2529_v39, %v1539_v21  ;;  %v1491_v28 = vpop.f32.mrf.mxu2 }
 0x192   : > { %v1515_v15 = vadd.f32 %v1491_v28, %v1362_v27 }
 0x193   : > { %v1591_v30 = vsel %vm1555_vm11, %v1539_v21, %v1575_v58 }
 0x194   : > { %1607 = vst.msk [vmem:[%s2537_s0 + $0x78] sm:$0xff] %vm955_vm2, %v1591_v30  ;;  %v1535_v33 = vadd.f32 %v2522_v34, %v1515_v15 }
 0x196   : > { %vm1551_vm12 = vcmp.ge.f32.partialorder %v1535_v33, 0.0  ;;  %v1571_v32 = vmul.f32 %v2529_v39, %v1535_v33 }
 0x198   : > { %v1587_v35 = vsel %vm1551_vm12, %v1535_v33, %v1571_v32 }
 0x199   : > { %1603 = vst.msk [vmem:[%s2537_s0 + $0x58] sm:$0xff] %vm955_vm2, %v1587_v35 }
 0x19a PF: > { %s19_s13 = sadd.s32 1, %s2077_s13   ;;  %s2661_s30 = smov %s2069_s11 }
 0x19b   : > { %p16_p12 = scmp.ge.s32.totalorder %s19_s13, 6   ;;  %s2662_s10 = smov %s2073_s12 }
 0x19c   : > { %s2663_s11 = smov %s2666_s14  ;;  %s2664_s12 = smov %s2670_s15 }
 0x19d   :  { %18 = sbr.rel (!%p16_p12) target bundleno = 4 (0x4), region = 103 }

</bundles_post_ra>
